<compile_context>
chip_gen: v5e
topology: v5e:2x2
jax: 0.10.0
libtpu: 0.0.40
codegen_flags: <defaults>
</compile_context>

<pallas_src>
import math

import jax
import jax.numpy as jnp
from jax.experimental import pallas as pl
from jax.experimental.pallas import tpu as pltpu

_EPS = 1e-5


def _ln_rows_kernel(x_ref, w_ref, b_ref, o_ref):
    """Generic path: x_ref is a (tm, C) tile; reduction over the lane axis C."""
    x = x_ref[...].astype(jnp.float32)
    inv_c = 1.0 / x.shape[-1]
    mu = jnp.sum(x, axis=-1, keepdims=True) * inv_c
    xc = x - mu
    var = jnp.sum(xc * xc, axis=-1, keepdims=True) * inv_c
    inv = jax.lax.rsqrt(var + _EPS)
    w = w_ref[...].astype(jnp.float32)
    b = b_ref[...].astype(jnp.float32)
    o_ref[...] = (xc * inv * w + b).astype(o_ref.dtype)


def _ln_packed_kernel(x_ref, seg_ref, w_ref, b_ref, o_ref):
    """Lane-packed path: x_ref is (tm, g*c); each kernel row holds `g` logical
    rows ("segments") of length c.  seg_ref is the host-built block-diagonal
    matrix with seg[l, m] = 1/c iff lanes l and m belong to the same segment,
    so `x @ seg` yields, at every lane, the mean over that lane's segment
    (reduce + broadcast in one lane-dense MXU pass).  w_ref / b_ref hold the
    affine params tiled g times (shape (1, g*c))."""
    x = x_ref[...].astype(jnp.float32)
    seg = seg_ref[...]                                     # (gc, gc) f32, 1/c folded in
    mu = jnp.dot(x, seg, preferred_element_type=jnp.float32,
                 precision=jax.lax.Precision.HIGHEST)
    xc = x - mu
    var = jnp.dot(xc * xc, seg, preferred_element_type=jnp.float32,
                  precision=jax.lax.Precision.HIGHEST)
    inv = jax.lax.rsqrt(var + _EPS)
    w = w_ref[...].astype(jnp.float32)
    b = b_ref[...].astype(jnp.float32)
    o_ref[...] = (xc * inv * w + b).astype(o_ref.dtype)


def _vmem_capacity_bytes() -> int:
    """Physical VMEM per core; conservative (v7x-sized) fallback if the query
    is unavailable."""
    try:
        return int(pltpu.get_tpu_info().vmem_capacity_bytes)
    except Exception:
        return 64 * 1024 * 1024


def _pick_row_tile(n_rows: int, row_elems: int, itemsize: int, sublane: int,
                   budget: int, row_cap: int, vmem_bytes_per_row: int) -> int:
    """Rows per block.  Budgeted so double-buffered I/O plus the kernel's f32
    temporaries stay inside `budget` (chosen per chip), while tiles stay large
    enough to amortize the ~0.35us per-grid-step overhead."""
    tm_cap = budget // max(vmem_bytes_per_row, 1)
    tm_cap = max(sublane, min(row_cap, (tm_cap // sublane) * sublane))
    total_in_bytes = n_rows * row_elems * itemsize
    if n_rows <= tm_cap and total_in_bytes <= (1 << 20):
        # Tiny problem (LGFF-sized): one block.  block dim == full array dim is
        # always a legal BlockSpec, and per-step overhead would dominate a
        # finer grid.
        return n_rows
    # Larger problems: keep >= 2 (>= 4 when comfortably large) grid steps so
    # the "parallel" row axis can shard across v7x's two TensorCores and the
    # DMA pipeline has something to overlap.
    min_steps = 4 if total_in_bytes >= (4 << 20) else 2
    tm = min(tm_cap, -(-n_rows // min_steps))
    return max(sublane, (tm // sublane) * sublane)


def withbias_layernorm(x, weight, bias):
    """LayerNorm over the last dim of x (any leading shape) with affine params,
    matching PyTorch WithBias_LayerNorm (biased variance, eps = 1e-5)."""
    orig_shape = x.shape
    c = orig_shape[-1]
    assert weight.shape == (c,) and bias.shape == (c,)

    x2 = x.reshape(-1, c)                    # contiguous reshape: no copy
    n = x2.shape[0]
    itemsize = jnp.dtype(x.dtype).itemsize
    sublane = max(8, 32 // itemsize)         # 8 for f32, 16 for bf16

    phys_vmem = _vmem_capacity_bytes()
    if phys_vmem >= (96 << 20):              # v5e / v6e: 128 MiB physical VMEM
        budget, limit_cap = 40 << 20, 64 << 20
    else:                                    # v7x: 64 MiB physical VMEM
        budget, limit_cap = 24 << 20, 48 << 20
    row_cap = 8192

    # Lane-dense packing: g = lcm(c,128)/c logical rows per kernel row when the
    # lcm stays small (LGFF: c=32 -> g=4, row_elems=128; c=48 -> g=8, 384).
    # Input/output reshapes are contiguous (free); only the tiny affine params
    # and the constant segment matrix are materialized host-side.
    lcm = (c * 128) // math.gcd(c, 128)
    g = lcm // c
    packed = (g > 1) and (lcm <= 512) and (n % g == 0)

    if packed:
        row_elems, n_rows = lcm, n // g
        xk = x2.reshape(n_rows, row_elems)
        lane_seg = jnp.arange(row_elems, dtype=jnp.int32) // c
        seg = (lane_seg[:, None] == lane_seg[None, :]).astype(jnp.float32) / c
        wk = jnp.tile(weight, (g,)).reshape(1, row_elems)
        bk = jnp.tile(bias, (g,)).reshape(1, row_elems)
        seg_bytes = row_elems * row_elems * 4
    else:
        row_elems, n_rows = c, n
        xk = x2
        wk = weight.reshape(1, c)
        bk = bias.reshape(1, c)
        seg_bytes = 0

    # ~(double-buffered in + out at input dtype) + (~8 f32 temporaries) per row.
    vmem_bytes_per_row = row_elems * (4 * itemsize + 32)
    tm = _pick_row_tile(n_rows, row_elems, itemsize, sublane,
                        budget - seg_bytes, row_cap, vmem_bytes_per_row)
    grid = (pl.cdiv(n_rows, tm),)
    vmem_limit = int(min(limit_cap,
                         max(16 << 20,
                             tm * vmem_bytes_per_row + seg_bytes + (4 << 20))))

    x_spec = pl.BlockSpec((tm, row_elems), lambda i: (i, 0))
    p_spec = pl.BlockSpec((1, row_elems), lambda i: (0, 0))
    out_spec = pl.BlockSpec((tm, row_elems), lambda i: (i, 0))

    if packed:
        kernel = _ln_packed_kernel
        in_specs = [x_spec,
                    pl.BlockSpec((row_elems, row_elems), lambda i: (0, 0)),
                    p_spec, p_spec]
        args = (xk, seg, wk, bk)
    else:
        kernel = _ln_rows_kernel
        in_specs = [x_spec, p_spec, p_spec]
        args = (xk, wk, bk)

    out = pl.pallas_call(
        kernel,
        out_shape=jax.ShapeDtypeStruct((n_rows, row_elems), x.dtype),
        grid_spec=pltpu.PrefetchScalarGridSpec(
            num_scalar_prefetch=0,
            grid=grid,
            in_specs=in_specs,
            out_specs=out_spec,
        ),
        compiler_params=pltpu.CompilerParams(
            dimension_semantics=("parallel",),
            vmem_limit_bytes=vmem_limit,
        ),
    )(*args)

    return out.reshape(orig_shape)


def _reference_layernorm(x, weight, bias):
    x32 = x.astype(jnp.float32)
    mu = jnp.mean(x32, axis=-1, keepdims=True)
    var = jnp.mean((x32 - mu) ** 2, axis=-1, keepdims=True)
    y = (x32 - mu) / jnp.sqrt(var + _EPS) * weight + bias
    return y.astype(x.dtype)


if __name__ == "__main__":
    key = jax.random.PRNGKey(0)
    k1, k2, k3, k4, k5, k6 = jax.random.split(key, 6)

    # LGFF-style input: NCHW feature map (B=2, C=32, H=16, W=16) brought to
    # channels-last (B, H*W, C) ("to_3d") before LayerNorm over C.
    B, C, H, W = 2, 32, 16, 16
    x_nchw = jax.random.normal(k1, (B, C, H, W), dtype=jnp.float32)
    x = jnp.transpose(x_nchw, (0, 2, 3, 1)).reshape(B, H * W, C)

    # Module init is weight=1, bias=0; use non-trivial values here so the
    # affine part of the kernel is actually exercised.
    weight = 1.0 + 0.1 * jax.random.normal(k2, (C,), dtype=jnp.float32)
    bias = 0.1 * jax.random.normal(k3, (C,), dtype=jnp.float32)

    out = jax.block_until_ready(withbias_layernorm(x, weight, bias))
    ref = _reference_layernorm(x, weight, bias)
    assert out.shape == x.shape
    assert float(jnp.max(jnp.abs(out - ref))) < 1e-4

    # lcm-packed path: C=48 (g=8, row_elems=384), row count divisible by g.
    C2 = 48
    x2 = jax.random.normal(k4, (2, 64, C2), dtype=jnp.float32)
    w2 = 1.0 + 0.05 * jax.random.normal(k5, (C2,), dtype=jnp.float32)
    b2 = 0.05 * jax.random.normal(k6, (C2,), dtype=jnp.float32)
    out2 = jax.block_until_ready(withbias_layernorm(x2, w2, b2))
    ref2 = _reference_layernorm(x2, w2, b2)
    assert float(jnp.max(jnp.abs(out2 - ref2))) < 1e-4

    # Generic (non-packed) fallback: C=48 with a row count not divisible by 8.
    x3 = jax.random.normal(k4, (5, 401, C2), dtype=jnp.float32)
    out3 = jax.block_until_ready(withbias_layernorm(x3, w2, b2))
    ref3 = _reference_layernorm(x3, w2, b2)
    assert float(jnp.max(jnp.abs(out3 - ref3))) < 1e-4

    # Multi-step grid with a ragged last row-block on the packed C=32 path.
    x4 = jax.random.normal(k1, (2, 4616, C), dtype=jnp.float32)
    out4 = jax.block_until_ready(withbias_layernorm(x4, weight, bias))
    ref4 = _reference_layernorm(x4, weight, bias)
    assert float(jnp.max(jnp.abs(out4 - ref4))) < 1e-4

    print("KERNEL_OK")
</pallas_src>

<mosaic_0001>
module attributes {stable_mosaic.version = 11 : i64} {
  func.func @_ln_packed_kernel(%arg0: i32, %arg1: memref<128x128xf32, #tpu.memory_space<vmem>>, %arg2: memref<128x128xf32, #tpu.memory_space<vmem>>, %arg3: memref<1x128xf32, #tpu.memory_space<vmem>>, %arg4: memref<1x128xf32, #tpu.memory_space<vmem>>, %arg5: memref<128x128xf32, #tpu.memory_space<vmem>>) attributes {dimension_semantics = [#tpu.dimension_semantics<parallel>], iteration_bounds = array<i64: 1>, scalar_prefetch = 0 : i64, scratch_operands = 0 : i64, tpu.core_type = #tpu.core_type<tc>, window_params = [{transform_indices = @transform_0, window_bounds = array<i64: 128, 128>}, {pipeline_mode = #tpu.pipeline_mode<synchronous>, transform_indices = @transform_1, window_bounds = array<i64: 128, 128>}, {pipeline_mode = #tpu.pipeline_mode<synchronous>, transform_indices = @transform_2, window_bounds = array<i64: 1, 128>}, {pipeline_mode = #tpu.pipeline_mode<synchronous>, transform_indices = @transform_3, window_bounds = array<i64: 1, 128>}, {transform_indices = @transform_4, window_bounds = array<i64: 128, 128>}]} {
    %c0 = arith.constant 0 : index
    %c0_0 = arith.constant 0 : index
    %0 = vector.load %arg1[%c0, %c0_0] : memref<128x128xf32, #tpu.memory_space<vmem>>, vector<128x128xf32>
    %c0_1 = arith.constant 0 : index
    %c0_2 = arith.constant 0 : index
    %1 = vector.load %arg2[%c0_1, %c0_2] : memref<128x128xf32, #tpu.memory_space<vmem>>, vector<128x128xf32>
    %cst = arith.constant dense<0.000000e+00> : vector<128x128xf32>
    %2 = tpu.matmul %0, %1, %cst {dimension_numbers = #tpu.dot_dimension_numbers<[1], [0], [0], [1], [0, 0, 1, 1], [], []>, precision = #tpu.contract_precision<fp32>} : vector<128x128xf32>, vector<128x128xf32>, vector<128x128xf32> -> vector<128x128xf32>
    %3 = arith.subf %0, %2 : vector<128x128xf32>
    %4 = arith.mulf %3, %3 : vector<128x128xf32>
    %cst_3 = arith.constant dense<0.000000e+00> : vector<128x128xf32>
    %5 = tpu.matmul %4, %1, %cst_3 {dimension_numbers = #tpu.dot_dimension_numbers<[1], [0], [0], [1], [0, 0, 1, 1], [], []>, precision = #tpu.contract_precision<fp32>} : vector<128x128xf32>, vector<128x128xf32>, vector<128x128xf32> -> vector<128x128xf32>
    %cst_4 = arith.constant 9.99999974E-6 : f32
    %6 = vector.broadcast %cst_4 : f32 to vector<128x128xf32>
    %7 = arith.addf %5, %6 : vector<128x128xf32>
    %8 = math.rsqrt %7 : vector<128x128xf32>
    %c0_5 = arith.constant 0 : index
    %c0_6 = arith.constant 0 : index
    %9 = vector.load %arg3[%c0_5, %c0_6] : memref<1x128xf32, #tpu.memory_space<vmem>>, vector<1x128xf32>
    %c0_7 = arith.constant 0 : index
    %c0_8 = arith.constant 0 : index
    %10 = vector.load %arg4[%c0_7, %c0_8] : memref<1x128xf32, #tpu.memory_space<vmem>>, vector<1x128xf32>
    %11 = arith.mulf %3, %8 : vector<128x128xf32>
    %12 = vector.broadcast %9 : vector<1x128xf32> to vector<128x128xf32>
    %13 = arith.mulf %11, %12 : vector<128x128xf32>
    %14 = vector.broadcast %10 : vector<1x128xf32> to vector<128x128xf32>
    %15 = arith.addf %13, %14 : vector<128x128xf32>
    %c0_9 = arith.constant 0 : index
    %c0_10 = arith.constant 0 : index
    %16 = vector.load %arg5[%c0_9, %c0_10] : memref<128x128xf32, #tpu.memory_space<vmem>>, vector<128x128xf32>
    tpu.vector_store %arg5[%c0_9, %c0_10], %15 {strides = array<i32>} : memref<128x128xf32, #tpu.memory_space<vmem>>, vector<128x128xf32>,
    return
  }
  func.func @transform_0(%arg0: i32) -> (i32, i32) {
    %c0_i32 = arith.constant 0 : i32
    %c0_i32_0 = arith.constant 0 : i32
    return %arg0, %c0_i32 : i32, i32
  }
  func.func @transform_1(%arg0: i32) -> (i32, i32) {
    %c0_i32 = arith.constant 0 : i32
    %c0_i32_0 = arith.constant 0 : i32
    %c0_i32_1 = arith.constant 0 : i32
    return %c0_i32, %c0_i32_0 : i32, i32
  }
  func.func @transform_2(%arg0: i32) -> (i32, i32) {
    %c0_i32 = arith.constant 0 : i32
    %c0_i32_0 = arith.constant 0 : i32
    %c0_i32_1 = arith.constant 0 : i32
    return %c0_i32, %c0_i32_0 : i32, i32
  }
  func.func @transform_3(%arg0: i32) -> (i32, i32) {
    %c0_i32 = arith.constant 0 : i32
    %c0_i32_0 = arith.constant 0 : i32
    %c0_i32_1 = arith.constant 0 : i32
    return %c0_i32, %c0_i32_0 : i32, i32
  }
  func.func @transform_4(%arg0: i32) -> (i32, i32) {
    %c0_i32 = arith.constant 0 : i32
    %c0_i32_0 = arith.constant 0 : i32
    return %arg0, %c0_i32 : i32, i32
  }
}

</mosaic_0001>

<bundles_post_ra>
// kernel: tpu_custom_call.1
= control target key start
LH: loop header
LB: loop body
LE: loop exit
PB: predicated region body
PF: predicated region fallthrough
CT: control target
= control target key end

     0   :  { %9 = vsyncpa [#allocation3], 0  ;;  %s3073_s0 = inlined_call_operand.hbm [shape: f32[128,128], index: 0, kind: input, shape index: {}]   ;;  %s3074_s1 = inlined_call_operand.hbm [shape: f32[128,128], index: 1, kind: input, shape index: {}]   ;;  %s3075_s2 = inlined_call_operand.vmem [shape: f32[1,128], index: 2, kind: input, shape index: {}]   ;;  %s3076_s3 = inlined_call_operand.vmem [shape: f32[1,128], index: 3, kind: input, shape index: {}]   ;;  %s3077_s4 = inlined_call_operand.hbm [shape: f32[128,128], index: 4, kind: output, shape index: {}]  }
   0x1   :  { %10 = vsyncpa [#allocation6], 0 }
   0x2   :  { %11 = vsyncpa [#allocation4], 0  ;;  %s16_s17 = sshll.u32 %s3073_s0, 4  ;;  %s2095_s18 = smov [#allocation2]   ;;  %s17_s17 = int_to_ptr.hbm [resolvable:$true] %s16_s17 }
   0x3   :  { %s18_s19 = sshll.u32 %s2095_s18, 4  ;;  %s29_s22 = sshll.u32 %s3074_s1, 4  ;;  %s19_s19 = int_to_ptr.vmem [resolvable:$true] %s18_s19  ;;  %s30_s22 = int_to_ptr.hbm [resolvable:$true] %s29_s22 }
   0x4   :  { %s2096_s23 = smov 128   ;;  %s2097_s24 = smov 8  }
   0x5   :  { %24 = dma.hbm_to_vmem [thread:$0]  %s17_s17, 2048, %s19_s19, [#allocation3], %s2096_s23, %s2096_s23, %s2097_s24  }
   0x6   :  { %s2098_s25 = smov [#allocation5]  }
   0x7   :  { %s31_s26 = sshll.u32 %s2098_s25, 4  ;;  %s32_s26 = int_to_ptr.vmem [resolvable:$true] %s31_s26 }
   0x8   :  { %37 = dma.hbm_to_vmem [thread:$0]  %s30_s22, 2048, %s32_s26, [#allocation6], %s2096_s23, %s2096_s23, %s2097_s24  }
   0x9   :  { %2089 = dma.done.wait [#allocation3], 2048  }
   0xa   :  { %2090 = vsyncadd [#allocation3], 4294965248 }
   0xb   :  { %2091 = dma.done.wait [#allocation6], 2048  }
   0xc   :  { %2092 = vsyncadd [#allocation6], 4294965248  ;;  %v81_v0 = vld [vmem:[#allocation5 + $0x78] sm:$0xff]  ;;  %v80_v1 = vld [vmem:[#allocation5 + $0x70] sm:$0xff]  ;;  %s1964_s5 = sshll.u32 %s3077_s4, 4  ;;  %s1965_s5 = int_to_ptr.hbm [resolvable:$true] %s1964_s5 }
   0xd   :  { %v79_v2 = vld [vmem:[#allocation5 + $0x68] sm:$0xff]  ;;  %v2137_v3 = vand.u32 4294901760, %v81_v0  ;;  %v2139_v4 = vand.u32 4294901760, %v80_v1  ;;  %v78_v6 = vld [vmem:[#allocation5 + $0x60] sm:$0xff]  ;;  %v77_v7 = vld [vmem:[#allocation5 + $0x58] sm:$0xff] }
   0xe   :  { %v2141_v5 = vand.u32 4294901760, %v79_v2  ;;  %v76_v8 = vld [vmem:[#allocation5 + $0x50] sm:$0xff]  ;;  %v2143_v9 = vand.u32 4294901760, %v78_v6  ;;  %v2145_v10 = vand.u32 4294901760, %v77_v7  ;;  %v75_v12 = vld [vmem:[#allocation5 + $0x48] sm:$0xff]  ;;  %v74_v13 = vld [vmem:[#allocation5 + $0x40] sm:$0xff] }
   0xf   :  { %v2147_v11 = vand.u32 4294901760, %v76_v8  ;;  %83 = vmatpush.msra.mxu0 %v2137_v3  ;;  %v2151_v14 = vsub.f32 %v81_v0, %v2137_v3  ;;  %v2154_v15 = vsub.f32 %v80_v1, %v2139_v4  ;;  %534 = vmatpush.msra.mxu3 %v2137_v3  ;;  %v2160_v17 = vand.u32 4294901760, %v75_v12  ;;  %v73_v18 = vld [vmem:[#allocation5 + $0x38] sm:$0xff]  ;;  %v72_v29 = vld [vmem:[#allocation5 + $0x30] sm:$0xff]  ;;  %v71_v36 = vld [vmem:[#allocation5 + $0x28] sm:$0xff] }
  0x10   :  { %v2158_v16 = vsub.f32 %v79_v2, %v2141_v5  ;;  %v2163_v19 = vsub.f32 %v78_v6, %v2143_v9  ;;  %v2166_v20 = vsub.f32 %v77_v7, %v2145_v10  ;;  %v2168_v21 = vand.u32 4294901760, %v74_v13  ;;  %v70_v43 = vld [vmem:[#allocation5 + $0x20] sm:$0xff]  ;;  %v69_v49 = vld [vmem:[#allocation5 + $0x18] sm:$0xff]  ;;  %v68_v55 = vld [vmem:[#allocation5 + $0x10] sm:$0xff] }
  0x11   :  { %3098 = vst [vmem:[#allocation11_spill] sm:$0xff] %v2154_v15  ;;  %v2171_v22 = vsub.f32 %v76_v8, %v2147_v11  ;;  %85 = vmatpush.msra.mxu0 %v2139_v4  ;;  %406 = vmatpush.msra.mxu2 %v2151_v14  ;;  %v2176_v23 = vand.u32 4294901760, %v2151_v14  ;;  %v2179_v24 = vand.u32 4294901760, %v2154_v15  ;;  %v2188_v27 = vand.u32 4294901760, %v73_v18  ;;  %v2259_v56 = vld [vmem:[#allocation2] sm:$0xff]  ;;  %v67_v62 = vld [vmem:[#allocation5 + $0x8] sm:$0xff] }
  0x12   :  { %3099 = vst [vmem:[#allocation12_spill] sm:$0xff] %v2158_v16  ;;  %v2182_v25 = vand.u32 4294901760, %v2158_v16  ;;  %536 = vmatpush.msra.mxu3 %v2139_v4  ;;  %v2186_v26 = vand.u32 4294901760, %v2163_v19  ;;  %v2191_v28 = vsub.f32 %v75_v12, %v2160_v17  ;;  %v2202_v33 = vand.u32 4294901760, %v2166_v20  ;;  %v66_v8 = vld [vmem:[#allocation5] sm:$0xff] }
  0x13   :  { %3100 = vst [vmem:[#allocation13_spill] sm:$0xff] %v2163_v19  ;;  %87 = vmatpush.msra.mxu0 %v2141_v5  ;;  %409 = vmatpush.msra.mxu2 %v2154_v15  ;;  %v246_v30 = vsub.f32 %v2151_v14, %v2176_v23  ;;  %v252_v31 = vsub.f32 %v2154_v15, %v2179_v24  ;;  %v2206_v34 = vand.u32 4294901760, %v2171_v22  ;;  %v2219_v40 = vand.u32 4294901760, %v72_v29 }
  0x14   :  { %3101 = vst [vmem:[#allocation14_spill] sm:$0xff] %v2166_v20  ;;  %v258_v32 = vsub.f32 %v2158_v16, %v2182_v25  ;;  %538 = vmatpush.msra.mxu3 %v2141_v5  ;;  %v2209_v35 = vsub.f32 %v74_v13, %v2168_v21  ;;  %v264_v39 = vsub.f32 %v2163_v19, %v2186_v26  ;;  %v2223_v41 = vand.u32 4294901760, %v2191_v28 }
  0x15   :  { %3102 = vst [vmem:[#allocation15_spill] sm:$0xff] %v2171_v22  ;;  %89 = vmatpush.msra.mxu0 %v2143_v9  ;;  %v2212_v37 = vand.u32 4294901760, %v246_v30  ;;  %412 = vmatpush.msra.mxu2 %v2158_v16  ;;  %v2215_v38 = vand.u32 4294901760, %v252_v31  ;;  %v2226_v42 = vsub.f32 %v73_v18, %v2188_v27  ;;  %v270_v45 = vsub.f32 %v2166_v20, %v2202_v33  ;;  %v2309_v30 = vld [vmem:[#allocation2 + $0x8] sm:$0xff] }
  0x16   :  { %3103 = vst [vmem:[#allocation16_spill] sm:$0xff] %v2191_v28  ;;  %540 = vmatpush.msra.mxu3 %v2143_v9  ;;  %v2230_v44 = vand.u32 4294901760, %v258_v32  ;;  %v2234_v46 = vand.u32 4294901760, %v71_v36  ;;  %v276_v47 = vsub.f32 %v2171_v22, %v2206_v34  ;;  %v2241_v48 = vand.u32 4294901760, %v2209_v35 }
  0x17   :  { %3104 = vst [vmem:[#allocation17_spill] sm:$0xff] %v2209_v35  ;;  %91 = vmatpush.msra.mxu0 %v2145_v10  ;;  %248 = vmatpush.msra.mxu1 %v2212_v37  ;;  %v2245_v50 = vand.u32 4294901760, %v264_v39  ;;  %v2247_v51 = vand.u32 4294901760, %v70_v43  ;;  %v2250_v52 = vsub.f32 %v72_v29, %v2219_v40  ;;  %v282_v53 = vsub.f32 %v2191_v28, %v2223_v41 }
  0x18   :  { %3105 = vst [vmem:[#allocation18_spill] sm:$0xff] %v2226_v42  ;;  %415 = vmatpush.msra.mxu2 %v2163_v19  ;;  %542 = vmatpush.msra.mxu3 %v2145_v10  ;;  %v2257_v54 = vand.u32 4294901760, %v2226_v42  ;;  %v2263_v57 = vand.u32 4294901760, %v270_v45  ;;  %v2265_v58 = vand.u32 4294901760, %v69_v49  ;;  %v2268_v59 = vsub.f32 %v71_v36, %v2234_v46 }
  0x19   :  { %93 = vmatpush.msra.mxu0 %v2147_v11  ;;  %254 = vmatpush.msra.mxu1 %v2215_v38  ;;  %3106 = vst [vmem:[#allocation19_spill] sm:$0xff] %v2250_v52  ;;  %v2271_v60 = vand.u32 4294901760, %v276_v47  ;;  %v288_v61 = vsub.f32 %v2209_v35, %v2241_v48  ;;  %v2278_v63 = vand.u32 4294901760, %v68_v55  ;;  %v2281_v0 = vand.u32 4294901760, %v2250_v52 }
  0x1a   :  { %418 = vmatpush.msra.mxu2 %v2166_v20  ;;  %544 = vmatpush.msra.mxu3 %v2147_v11  ;;  %3107 = vst [vmem:[#allocation20_spill] sm:$0xff] %v2259_v56  ;;  %v2284_v1 = vsub.f32 %v70_v43, %v2247_v51  ;;  %v2287_v2 = vand.u32 4294901760, %v2259_v56  ;;  %v2290_v6 = vand.u32 4294901760, %v282_v53  ;;  %v294_v7 = vsub.f32 %v2226_v42, %v2257_v54 }
  0x1b   :  { %95 = vmatpush.msra.mxu0 %v2160_v17  ;;  %260 = vmatpush.msra.mxu1 %v2230_v44  ;;  %3108 = vst [vmem:[#allocation21_spill] sm:$0xff] %v2268_v59  ;;  %v2297_v12 = vand.u32 4294901760, %v67_v62  ;;  %v2300_v13 = vand.u32 4294901760, %v2268_v59  ;;  %v2303_v18 = vsub.f32 %v69_v49, %v2265_v58  ;;  %v2312_v31 = vand.u32 4294901760, %v288_v61 }
  0x1c   :  { %421 = vmatpush.msra.mxu2 %v2171_v22  ;;  %546 = vmatpush.msra.mxu3 %v2160_v17  ;;  %3109 = vst [vmem:[#allocation22_spill] sm:$0xff] %v2284_v1  ;;  %v2307_v29 = vsub.f32 %v2259_v56, %v2287_v2  ;;  %v300_v32 = vsub.f32 %v2250_v52, %v2281_v0  ;;  %v2319_v36 = vand.u32 4294901760, %v66_v8  ;;  %v2322_v39 = vand.u32 4294901760, %v2284_v1 }
  0x1d   :  { %97 = vmatpush.msra.mxu0 %v2168_v21  ;;  %266 = vmatpush.msra.mxu1 %v2245_v50  ;;  %3110 = vst [vmem:[#allocation23_spill] sm:$0xff] %v2303_v18  ;;  %v2325_v43 = vsub.f32 %v68_v55, %v2278_v63  ;;  %v2331_v47 = vand.u32 4294901760, %v2309_v30  ;;  %v2335_v49 = vand.u32 4294901760, %v294_v7  ;;  %v306_v53 = vsub.f32 %v2268_v59, %v2300_v13 }
  0x1e   :  { %424 = vmatpush.msra.mxu2 %v2191_v28  ;;  %548 = vmatpush.msra.mxu3 %v2168_v21  ;;  %3111 = vst [vmem:[#allocation24_spill] sm:$0xff] %v2309_v30  ;;  %v116_v45 = vand.u32 4294901760, %v2307_v29  ;;  %v2340_v55 = vand.u32 4294901760, %v2303_v18  ;;  %v2343_v61 = vsub.f32 %v67_v62, %v2297_v12  ;;  %v2349_v56 = vand.u32 4294901760, %v300_v32 }
  0x1f   :  { %99 = vmatpush.msra.mxu0 %v2188_v27  ;;  %272 = vmatpush.msra.mxu1 %v2263_v57  ;;  %3112 = vst [vmem:[#allocation25_spill] sm:$0xff] %v2325_v43  ;;  %v312_v7 = vsub.f32 %v2284_v1, %v2322_v39  ;;  %v2366_v32 = vand.u32 4294901760, %v306_v53 }
  0x20   :  { %427 = vmatpush.msra.mxu2 %v2209_v35  ;;  %550 = vmatpush.msra.mxu3 %v2188_v27  ;;  %v2357_v35 = vsub.f32 %v66_v8, %v2319_v36  ;;  %v117_v62 = vsub.f32 %v2307_v29, %v116_v45  ;;  %v318_v28 = vsub.f32 %v2303_v18, %v2340_v55  ;;  %v2371_v8 = vand.u32 4294901760, %v2343_v61 }
  0x21   :  { %101 = vmatpush.msra.mxu0 %v2219_v40  ;;  %278 = vmatpush.msra.mxu1 %v2271_v60  ;;  %3113 = vst [vmem:[#allocation26_spill] sm:$0xff] %v2366_v32 }
  0x22   :  { %430 = vmatpush.msra.mxu2 %v2226_v42  ;;  %552 = vmatpush.msra.mxu3 %v2219_v40  ;;  %v2354_v42 = vand.u32 4294901760, %v2325_v43  ;;  %v2384_v22 = vand.u32 4294901760, %v2357_v35  ;;  %v118_v20 = vand.u32 4294901760, %v117_v62  ;;  %v330_v16 = vsub.f32 %v2343_v61, %v2371_v8 }
  0x23   :  { %103 = vmatpush.msra.mxu0 %v2234_v46  ;;  %284 = vmatpush.msra.mxu1 %v2290_v6 }
  0x24   :  { %433 = vmatpush.msra.mxu2 %v2250_v52  ;;  %554 = vmatpush.msra.mxu3 %v2234_v46  ;;  %v123_v52 = vsub.f32 %v2309_v30, %v2331_v47  ;;  %v2379_v30 = vand.u32 4294901760, %v312_v7  ;;  %v324_v53 = vsub.f32 %v2325_v43, %v2354_v42  ;;  %v2393_v7 = vand.u32 4294901760, %v318_v28 }
  0x25   :  { %105 = vmatpush.msra.mxu0 %v2247_v51  ;;  %290 = vmatpush.msra.mxu1 %v2312_v31 }
  0x26   :  { %436 = vmatpush.msra.mxu2 %v2268_v59  ;;  %556 = vmatpush.msra.mxu3 %v2247_v51  ;;  %v2373_v59 = vld [vmem:[#allocation2 + $0x10] sm:$0xff]  ;;  %v2401_v62 = vand.u32 4294901760, %v324_v53 }
  0x27   :  { %107 = vmatpush.msra.mxu0 %v2265_v58  ;;  %296 = vmatpush.msra.mxu1 %v2335_v49  ;;  %3114 = vst [vmem:[#allocation27_spill] sm:$0xff] %v2373_v59  ;;  %v2389_v19 = vand.u32 4294901760, %v2373_v59 }
  0x28   :  { %439 = vmatpush.msra.mxu2 %v2284_v1  ;;  %558 = vmatpush.msra.mxu3 %v2265_v58  ;;  %v124_v1 = vand.u32 4294901760, %v123_v52 }
  0x29   :  { %109 = vmatpush.msra.mxu0 %v2278_v63  ;;  %302 = vmatpush.msra.mxu1 %v2349_v56  ;;  %v131_v15 = vsub.f32 %v2373_v59, %v2389_v19 }
  0x2a   :  { %442 = vmatpush.msra.mxu2 %v2303_v18  ;;  %560 = vmatpush.msra.mxu3 %v2278_v63  ;;  %v336_v18 = vsub.f32 %v2357_v35, %v2384_v22  ;;  %v125_v28 = vsub.f32 %v123_v52, %v124_v1 }
  0x2b   :  { %111 = vmatpush.msra.mxu0 %v2297_v12  ;;  %308 = vmatpush.msra.mxu1 %v2366_v32  ;;  %v2412_v32 = vld [vmem:[#allocation2 + $0x18] sm:$0xff]  ;;  %v132_v59 = vand.u32 4294901760, %v131_v15 }
  0x2c   :  { %445 = vmatpush.msra.mxu2 %v2325_v43  ;;  %562 = vmatpush.msra.mxu3 %v2297_v12  ;;  %v2409_v43 = vand.u32 4294901760, %v330_v16  ;;  %v126_v53 = vand.u32 4294901760, %v125_v28  ;;  %v2421_v16 = vand.u32 4294901760, %v2412_v32 }
  0x2d   :  { %113 = vmatpush.msra.mxu0 %v2319_v36  ;;  %314 = vmatpush.msra.mxu1 %v2379_v30 }
  0x2e   :  { %119 = vmatmul.f32.vlgmr.msra.gmra.mxu0 %v118_v20  ;;  %448 = vmatpush.msra.mxu2 %v2343_v61  ;;  %v2417_v20 = vand.u32 4294901760, %v336_v18  ;;  %v133_v18 = vsub.f32 %v131_v15, %v132_v59 }
  0x2f   :  { %320 = vmatpush.msra.mxu1 %v2393_v7  ;;  %564 = vmatpush.msra.mxu3 %v2319_v36 }
  0x30   :  { %451 = vmatpush.msra.mxu2 %v2357_v35  ;;  %568 = vmatmul.f32.vlgmr.msra.gmra.mxu3 %v116_v45 }
  0x31   :  { %326 = vmatpush.msra.mxu1 %v2401_v62  ;;  %454 = vmatmul.f32.vlgmr.msra.gmra.mxu2 %v2307_v29  ;;  %v139_v29 = vsub.f32 %v2412_v32, %v2421_v16 }
  0x32   :  { %665 = vmatpush.msrb.mxu0 %v2176_v23  ;;  %921 = vmatpush.msrb.mxu2 %v2137_v3 }
  0x33   :  { %332 = vmatpush.msra.mxu1 %v2409_v43  ;;  %1086 = vmatpush.msrb.mxu3 %v2212_v37  ;;  %v2435_v37 = vld [vmem:[#allocation2 + $0x20] sm:$0xff]  ;;  %v140_v45 = vand.u32 4294901760, %v139_v29 }
  0x34   :  { %669 = vmatpush.msrb.mxu0 %v2179_v24  ;;  %923 = vmatpush.msrb.mxu2 %v2139_v4  ;;  %v2441_v28 = vand.u32 4294901760, %v2435_v37 }
  0x35   :  { %338 = vmatpush.msra.mxu1 %v2417_v20  ;;  %1092 = vmatpush.msrb.mxu3 %v2215_v38  ;;  %v134_v38 = vand.u32 4294901760, %v133_v18 }
  0x36   :  { %127 = vmatmul.f32.gmra.mxu0 %v126_v53  ;;  %340 = vmatmul.f32.vlgmr.msra.gmra.mxu1 %v2287_v2 }
  0x37   :  { %792 = vmatpush.msrb.mxu1 %v2137_v3  ;;  %673 = vmatpush.msrb.mxu0 %v2182_v25 }
  0x38   :  { %574 = vmatmul.f32.gmra.mxu3 %v124_v1  ;;  %925 = vmatpush.msrb.mxu2 %v2141_v5  ;;  %v147_v1 = vsub.f32 %v2435_v37, %v2441_v28 }
  0x39   :  { %459 = vmatmul.f32.gmra.mxu2 %v123_v52  ;;  %794 = vmatpush.msrb.mxu1 %v2139_v4  ;;  %v141_v52 = vsub.f32 %v139_v29, %v140_v45 }
  0x3a   :  { %677 = vmatpush.msrb.mxu0 %v2186_v26  ;;  %1098 = vmatpush.msrb.mxu3 %v2230_v44  ;;  %v2453_v44 = vld [vmem:[#allocation2 + $0x28] sm:$0xff]  ;;  %v148_v53 = vand.u32 4294901760, %v147_v1 }
  0x3b   :  { %796 = vmatpush.msrb.mxu1 %v2141_v5  ;;  %927 = vmatpush.msrb.mxu2 %v2143_v9  ;;  %v2460_v18 = vand.u32 4294901760, %v2453_v44 }
  0x3c   :  { %681 = vmatpush.msrb.mxu0 %v2202_v33  ;;  %1104 = vmatpush.msrb.mxu3 %v2245_v50  ;;  %v142_v50 = vand.u32 4294901760, %v141_v52 }
  0x3d   :  { %798 = vmatpush.msrb.mxu1 %v2143_v9  ;;  %929 = vmatpush.msrb.mxu2 %v2145_v10 }
  0x3e   :  { %135 = vmatmul.f32.gmra.mxu0 %v134_v38  ;;  %344 = vmatmul.f32.gmra.mxu1 %v2331_v47 }
  0x3f   :  { %800 = vmatpush.msrb.mxu1 %v2145_v10  ;;  %685 = vmatpush.msrb.mxu0 %v2206_v34 }
  0x40   :  { %580 = vmatmul.f32.gmra.mxu3 %v132_v59  ;;  %931 = vmatpush.msrb.mxu2 %v2147_v11  ;;  %v155_v59 = vsub.f32 %v2453_v44, %v2460_v18 }
  0x41   :  { %464 = vmatmul.f32.gmra.mxu2 %v131_v15  ;;  %802 = vmatpush.msrb.mxu1 %v2147_v11  ;;  %v149_v15 = vsub.f32 %v147_v1, %v148_v53 }
  0x42   :  { %689 = vmatpush.msrb.mxu0 %v2223_v41  ;;  %1110 = vmatpush.msrb.mxu3 %v2263_v57  ;;  %v2473_v57 = vld [vmem:[#allocation2 + $0x30] sm:$0xff]  ;;  %v156_v38 = vand.u32 4294901760, %v155_v59 }
  0x43   :  { %804 = vmatpush.msrb.mxu1 %v2160_v17  ;;  %933 = vmatpush.msrb.mxu2 %v2160_v17  ;;  %3115 = vst [vmem:[#allocation28_spill] sm:$0xff] %v2473_v57  ;;  %v2480_v52 = vand.u32 4294901760, %v2473_v57 }
  0x44   :  { %693 = vmatpush.msrb.mxu0 %v2241_v48  ;;  %1116 = vmatpush.msrb.mxu3 %v2271_v60  ;;  %v150_v60 = vand.u32 4294901760, %v149_v15 }
  0x45   :  { %806 = vmatpush.msrb.mxu1 %v2168_v21  ;;  %935 = vmatpush.msrb.mxu2 %v2168_v21 }
  0x46   :  { %143 = vmatmul.f32.gmra.mxu0 %v142_v50  ;;  %348 = vmatmul.f32.gmra.mxu1 %v2389_v19 }
  0x47   :  { %697 = vmatpush.msrb.mxu0 %v2257_v54  ;;  %808 = vmatpush.msrb.mxu1 %v2188_v27 }
  0x48   :  { %586 = vmatmul.f32.gmra.mxu3 %v140_v45  ;;  %937 = vmatpush.msrb.mxu2 %v2188_v27  ;;  %v163_v45 = vsub.f32 %v2473_v57, %v2480_v52  ;;  %v3118_v57 = vld [vmem:[#allocation11_spill] sm:$0xff] }
  0x49   :  { %469 = vmatmul.f32.gmra.mxu2 %v139_v29  ;;  %701 = vmatpush.msrb.mxu0 %v2281_v0  ;;  %v157_v29 = vsub.f32 %v155_v59, %v156_v38 }
  0x4a   :  { %810 = vmatpush.msrb.mxu1 %v2219_v40  ;;  %1122 = vmatpush.msrb.mxu3 %v2290_v6  ;;  %v2493_v6 = vld [vmem:[#allocation2 + $0x38] sm:$0xff]  ;;  %v164_v50 = vand.u32 4294901760, %v163_v45 }
  0x4b   :  { %705 = vmatpush.msrb.mxu0 %v2300_v13  ;;  %939 = vmatpush.msrb.mxu2 %v2219_v40  ;;  %3116 = vst [vmem:[#allocation29_spill] sm:$0xff] %v2493_v6  ;;  %v2500_v15 = vand.u32 4294901760, %v2493_v6 }
  0x4c   :  { %812 = vmatpush.msrb.mxu1 %v2234_v46  ;;  %1128 = vmatpush.msrb.mxu3 %v2312_v31  ;;  %v158_v31 = vand.u32 4294901760, %v157_v29 }
  0x4d   :  { %709 = vmatpush.msrb.mxu0 %v2322_v39  ;;  %941 = vmatpush.msrb.mxu2 %v2234_v46 }
  0x4e   :  { %151 = vmatmul.f32.gmra.mxu0 %v150_v60  ;;  %352 = vmatmul.f32.gmra.mxu1 %v2421_v16 }
  0x4f   :  { %814 = vmatpush.msrb.mxu1 %v2247_v51  ;;  %713 = vmatpush.msrb.mxu0 %v2340_v55 }
  0x50   :  { %592 = vmatmul.f32.gmra.mxu3 %v148_v53  ;;  %943 = vmatpush.msrb.mxu2 %v2247_v51  ;;  %v171_v53 = vsub.f32 %v2493_v6, %v2500_v15  ;;  %v3119_v6 = vld [vmem:[#allocation12_spill] sm:$0xff] }
  0x51   :  { %474 = vmatmul.f32.gmra.mxu2 %v147_v1  ;;  %816 = vmatpush.msrb.mxu1 %v2265_v58  ;;  %v165_v1 = vsub.f32 %v163_v45, %v164_v50 }
  0x52   :  { %717 = vmatpush.msrb.mxu0 %v2354_v42  ;;  %1134 = vmatpush.msrb.mxu3 %v2335_v49  ;;  %v2513_v49 = vld [vmem:[#allocation2 + $0x40] sm:$0xff]  ;;  %v172_v29 = vand.u32 4294901760, %v171_v53 }
  0x53   :  { %818 = vmatpush.msrb.mxu1 %v2278_v63  ;;  %945 = vmatpush.msrb.mxu2 %v2265_v58  ;;  %v166_v60 = vand.u32 4294901760, %v165_v1 }
  0x54   :  { %721 = vmatpush.msrb.mxu0 %v2371_v8  ;;  %1140 = vmatpush.msrb.mxu3 %v2349_v56  ;;  %v3117_v56 = vld [vmem:[#allocation26_spill] sm:$0xff] }
  0x55   :  { %820 = vmatpush.msrb.mxu1 %v2297_v12  ;;  %947 = vmatpush.msrb.mxu2 %v2278_v63 }
  0x56   :  { %159 = vmatmul.f32.gmra.mxu0 %v158_v31  ;;  %356 = vmatmul.f32.gmra.mxu1 %v2441_v28  ;;  %v2520_v31 = vand.u32 4294901760, %v2513_v49 }
  0x57   :  { %725 = vmatpush.msrb.mxu0 %v2384_v22  ;;  %822 = vmatpush.msrb.mxu1 %v2319_v36 }
  0x58   :  { %598 = vmatmul.f32.gmra.mxu3 %v156_v38  ;;  %949 = vmatpush.msrb.mxu2 %v2297_v12 }
  0x59   :  { %1244 = vmatpush.msra.mxu0 %v2151_v14  ;;  %479 = vmatmul.f32.gmra.mxu2 %v155_v59  ;;  %v173_v14 = vsub.f32 %v171_v53, %v172_v29  ;;  %v179_v59 = vsub.f32 %v2513_v49, %v2520_v31 }
  0x5a   :  { %1146 = vmatpush.msrb.mxu3 %v3117_v56  ;;  %1372 = vmatpush.msra.mxu1 %v2137_v3  ;;  %v3122_v56 = vld [vmem:[#allocation15_spill] sm:$0xff] }
  0x5b   :  { %1247 = vmatpush.msra.mxu0 %v3118_v57  ;;  %951 = vmatpush.msrb.mxu2 %v2319_v36  ;;  %v2533_v57 = vld [vmem:[#allocation2 + $0x48] sm:$0xff]  ;;  %v174_v38 = vand.u32 4294901760, %v173_v14  ;;  %v3125_v14 = vld [vmem:[#allocation18_spill] sm:$0xff] }
  0x5c   :  { %1152 = vmatpush.msrb.mxu3 %v2379_v30  ;;  %1374 = vmatpush.msra.mxu1 %v2139_v4  ;;  %v3120_v30 = vld [vmem:[#allocation13_spill] sm:$0xff]  ;;  %v2540_v1 = vand.u32 4294901760, %v2533_v57 }
  0x5d   :  { %1250 = vmatpush.msra.mxu0 %v3119_v6  ;;  %1503 = vmatpush.msra.mxu2 %v2176_v23  ;;  %v180_v6 = vand.u32 4294901760, %v179_v59  ;;  %v3123_v23 = vld [vmem:[#allocation16_spill] sm:$0xff] }
  0x5e   :  { %1158 = vmatpush.msrb.mxu3 %v2393_v7  ;;  %167 = vmatmul.f32.gmra.mxu0 %v166_v60  ;;  %v3121_v7 = vld [vmem:[#allocation14_spill] sm:$0xff] }
  0x5f   :  { %360 = vmatmul.f32.gmra.mxu1 %v2460_v18  ;;  %1253 = vmatpush.msra.mxu0 %v3120_v30  ;;  %v3126_v30 = vld [vmem:[#allocation19_spill] sm:$0xff] }
  0x60   :  { %1376 = vmatpush.msra.mxu1 %v2141_v5  ;;  %604 = vmatmul.f32.gmra.mxu3 %v164_v50  ;;  %v187_v50 = vsub.f32 %v2533_v57, %v2540_v1 }
  0x61   :  { %484 = vmatmul.f32.gmra.mxu2 %v163_v45  ;;  %1256 = vmatpush.msra.mxu0 %v3121_v7  ;;  %v181_v45 = vsub.f32 %v179_v59, %v180_v6 }
  0x62   :  { %1378 = vmatpush.msra.mxu1 %v2143_v9  ;;  %1164 = vmatpush.msrb.mxu3 %v2401_v62  ;;  %v2553_v62 = vld [vmem:[#allocation2 + $0x50] sm:$0xff] }
  0x63   :  { %1259 = vmatpush.msra.mxu0 %v3122_v56  ;;  %1507 = vmatpush.msra.mxu2 %v2179_v24  ;;  %v3124_v24 = vld [vmem:[#allocation17_spill] sm:$0xff]  ;;  %v2560_v60 = vand.u32 4294901760, %v2553_v62 }
  0x64   :  { %1380 = vmatpush.msra.mxu1 %v2145_v10  ;;  %1170 = vmatpush.msrb.mxu3 %v2409_v43  ;;  %v188_v43 = vand.u32 4294901760, %v187_v50 }
  0x65   :  { %1262 = vmatpush.msra.mxu0 %v3123_v23  ;;  %1511 = vmatpush.msra.mxu2 %v2182_v25  ;;  %v182_v25 = vand.u32 4294901760, %v181_v45 }
  0x66   :  { %175 = vmatmul.f32.gmra.mxu0 %v174_v38  ;;  %1382 = vmatpush.msra.mxu1 %v2147_v11  ;;  %v3129_v38 = vld [vmem:[#allocation23_spill] sm:$0xff] }
  0x67   :  { %364 = vmatmul.f32.gmra.mxu1 %v2480_v52  ;;  %1265 = vmatpush.msra.mxu0 %v3124_v24 }
  0x68   :  { %610 = vmatmul.f32.gmra.mxu3 %v172_v29  ;;  %1515 = vmatpush.msra.mxu2 %v2186_v26  ;;  %v189_v26 = vsub.f32 %v187_v50, %v188_v43  ;;  %v3127_v29 = vld [vmem:[#allocation21_spill] sm:$0xff] }
  0x69   :  { %489 = vmatmul.f32.gmra.mxu2 %v171_v53  ;;  %1384 = vmatpush.msra.mxu1 %v2160_v17  ;;  %v195_v53 = vsub.f32 %v2553_v62, %v2560_v60 }
  0x6a   :  { %1268 = vmatpush.msra.mxu0 %v3125_v14  ;;  %1176 = vmatpush.msrb.mxu3 %v2417_v20  ;;  %v2573_v20 = vld [vmem:[#allocation2 + $0x58] sm:$0xff] }
  0x6b   :  { %1386 = vmatpush.msra.mxu1 %v2168_v21  ;;  %1519 = vmatpush.msra.mxu2 %v2202_v33  ;;  %v196_v33 = vand.u32 4294901760, %v195_v53  ;;  %v2580_v7 = vand.u32 4294901760, %v2573_v20 }
  0x6c   :  { %1630 = vmatpush.msra.mxu3 %v2137_v3  ;;  %1271 = vmatpush.msra.mxu0 %v3126_v30  ;;  %v3128_v3 = vld [vmem:[#allocation22_spill] sm:$0xff] }
  0x6d   :  { %1388 = vmatpush.msra.mxu1 %v2188_v27  ;;  %1523 = vmatpush.msra.mxu2 %v2206_v34  ;;  %v3130_v34 = vld [vmem:[#allocation25_spill] sm:$0xff] }
  0x6e   :  { %1632 = vmatpush.msra.mxu3 %v2139_v4  ;;  %183 = vmatmul.f32.gmra.mxu0 %v182_v25  ;;  %v190_v4 = vand.u32 4294901760, %v189_v26 }
  0x6f   :  { %368 = vmatmul.f32.gmra.mxu1 %v2500_v15  ;;  %1274 = vmatpush.msra.mxu0 %v3127_v29 }
  0x70   :  { %1390 = vmatpush.msra.mxu1 %v2219_v40  ;;  %616 = vmatmul.f32.gmra.mxu3 %v180_v6  ;;  %v203_v6 = vsub.f32 %v2573_v20, %v2580_v7 }
  0x71   :  { %494 = vmatmul.f32.gmra.mxu2 %v179_v59  ;;  %1277 = vmatpush.msra.mxu0 %v3128_v3  ;;  %v197_v59 = vsub.f32 %v195_v53, %v196_v33 }
  0x72   :  { %1392 = vmatpush.msra.mxu1 %v2234_v46  ;;  %1634 = vmatpush.msra.mxu3 %v2141_v5  ;;  %v2593_v5 = vld [vmem:[#allocation2 + $0x60] sm:$0xff] }
  0x73   :  { %1280 = vmatpush.msra.mxu0 %v3129_v38  ;;  %1527 = vmatpush.msra.mxu2 %v2223_v41  ;;  %v204_v41 = vand.u32 4294901760, %v203_v6 }
  0x74   :  { %1394 = vmatpush.msra.mxu1 %v2247_v51  ;;  %1636 = vmatpush.msra.mxu3 %v2143_v9  ;;  %v198_v9 = vand.u32 4294901760, %v197_v59 }
  0x75   :  { %1283 = vmatpush.msra.mxu0 %v3130_v34  ;;  %1531 = vmatpush.msra.mxu2 %v2241_v48  ;;  %v2600_v48 = vand.u32 4294901760, %v2593_v5 }
  0x76   :  { %191 = vmatmul.f32.gmra.mxu0 %v190_v4  ;;  %1396 = vmatpush.msra.mxu1 %v2265_v58 }
  0x77   :  { %372 = vmatmul.f32.gmra.mxu1 %v2520_v31  ;;  %1286 = vmatpush.msra.mxu0 %v2343_v61  ;;  %v211_v61 = vsub.f32 %v2593_v5, %v2600_v48 }
  0x78   :  { %622 = vmatmul.f32.gmra.mxu3 %v188_v43  ;;  %1535 = vmatpush.msra.mxu2 %v2257_v54  ;;  %v205_v54 = vsub.f32 %v203_v6, %v204_v41 }
  0x79   :  { %499 = vmatmul.f32.gmra.mxu2 %v187_v50  ;;  %1398 = vmatpush.msra.mxu1 %v2278_v63 }
  0x7a   :  { %1289 = vmatpush.msra.mxu0 %v2357_v35  ;;  %1638 = vmatpush.msra.mxu3 %v2145_v10  ;;  %v2612_v35 = vld [vmem:[#allocation2 + $0x68] sm:$0xff]  ;;  %v206_v10 = vand.u32 4294901760, %v205_v54 }
  0x7b   :  { %1400 = vmatpush.msra.mxu1 %v2297_v12  ;;  %1539 = vmatpush.msra.mxu2 %v2281_v0  ;;  %v2618_v0 = vand.u32 4294901760, %v2612_v35 }
  0x7c   :  { %1640 = vmatpush.msra.mxu3 %v2147_v11  ;;  %v212_v11 = vand.u32 4294901760, %v211_v61 }
  0x7d   :  { %1402 = vmatpush.msra.mxu1 %v2319_v36  ;;  %1543 = vmatpush.msra.mxu2 %v2300_v13  ;;  %v2627_v13 = vld [vmem:[#allocation2 + $0x70] sm:$0xff] }
  0x7e   :  { %199 = vmatmul.f32.gmra.mxu0 %v198_v9  ;;  %1642 = vmatpush.msra.mxu3 %v2160_v17  ;;  %v213_v17 = vsub.f32 %v211_v61, %v212_v11 }
  0x7f   :  { %376 = vmatmul.f32.gmra.mxu1 %v2540_v1  ;;  %1547 = vmatpush.msra.mxu2 %v2322_v39 }
  0x80   :  { %628 = vmatmul.f32.gmra.mxu3 %v196_v33 }
  0x81   :  { %504 = vmatmul.f32.gmra.mxu2 %v195_v53  ;;  %1644 = vmatpush.msra.mxu3 %v2168_v21  ;;  %v219_v21 = vsub.f32 %v2612_v35, %v2618_v0 }
  0x82   :  { %1551 = vmatpush.msra.mxu2 %v2340_v55  ;;  %v2641_v55 = vld [vmem:[#allocation2 + $0x78] sm:$0xff] }
  0x83   :  { %1646 = vmatpush.msra.mxu3 %v2188_v27  ;;  %v214_v27 = vand.u32 4294901760, %v213_v17  ;;  %3131 = vst [vmem:[#allocation26_spill] sm:$0xff] %v2641_v55 }
  0x84   :  { %1555 = vmatpush.msra.mxu2 %v2354_v42  ;;  %v220_v42 = vand.u32 4294901760, %v219_v21 }
  0x85   :  { %1648 = vmatpush.msra.mxu3 %v2219_v40  ;;  %v2633_v40 = vand.u32 4294901760, %v2627_v13 }
  0x86   :  { %207 = vmatmul.f32.gmra.mxu0 %v206_v10  ;;  %1559 = vmatpush.msra.mxu2 %v2371_v8 }
  0x87   :  { %380 = vmatmul.f32.gmra.mxu1 %v2560_v60  ;;  %1650 = vmatpush.msra.mxu3 %v2234_v46  ;;  %v221_v46 = vsub.f32 %v219_v21, %v220_v42  ;;  %v227_v39 = vsub.f32 %v2627_v13, %v2633_v40 }
  0x88   :  { %634 = vmatmul.f32.gmra.mxu3 %v204_v41  ;;  %1563 = vmatpush.msra.mxu2 %v2384_v22 }
  0x89   :  { %509 = vmatmul.f32.gmra.mxu2 %v203_v6  ;;  %1652 = vmatpush.msra.mxu3 %v2247_v51  ;;  %v222_v22 = vand.u32 4294901760, %v221_v46  ;;  %v228_v51 = vand.u32 4294901760, %v227_v39 }
  0x8b   :  { %1654 = vmatpush.msra.mxu3 %v2265_v58  ;;  %v2646_v58 = vand.u32 4294901760, %v2641_v55 }
  0x8d   :  { %1656 = vmatpush.msra.mxu3 %v2278_v63  ;;  %v229_v63 = vsub.f32 %v227_v39, %v228_v51  ;;  %v235_v8 = vsub.f32 %v2641_v55, %v2646_v58 }
  0x8e   :  { %215 = vmatmul.f32.gmra.mxu0 %v214_v27 }
  0x8f   :  { %384 = vmatmul.f32.gmra.mxu1 %v2580_v7  ;;  %1658 = vmatpush.msra.mxu3 %v2297_v12  ;;  %v230_v56 = vand.u32 4294901760, %v229_v63  ;;  %v236_v12 = vand.u32 4294901760, %v235_v8 }
  0x90   :  { %640 = vmatmul.f32.gmra.mxu3 %v212_v11 }
  0x91   :  { %514 = vmatmul.f32.gmra.mxu2 %v211_v61  ;;  %1660 = vmatpush.msra.mxu3 %v2319_v36  ;;  %v237_v36 = vsub.f32 %v235_v8, %v236_v12 }
  0x93   :  { %v238_v23 = vand.u32 4294901760, %v237_v36 }
  0x96   :  { %223 = vmatmul.f32.gmra.mxu0 %v222_v22 }
  0x97   :  { %388 = vmatmul.f32.gmra.mxu1 %v2600_v48 }
  0x98   :  { %646 = vmatmul.f32.gmra.mxu3 %v220_v42 }
  0x99   :  { %519 = vmatmul.f32.gmra.mxu2 %v219_v21 }
  0x9e   :  { %231 = vmatmul.f32.gmra.mxu0 %v230_v56 }
  0x9f   :  { %392 = vmatmul.f32.gmra.mxu1 %v2618_v0 }
  0xa0   :  { %652 = vmatmul.f32.gmra.mxu3 %v228_v51 }
  0xa1   :  { %524 = vmatmul.f32.gmra.mxu2 %v227_v39 }
  0xa6   :  { %239 = vmatmul.f32.gmra.mxu0 %v238_v23 }
  0xa7   :  { %396 = vmatmul.f32.gmra.mxu1 %v2633_v40 }
  0xa8   :  { %658 = vmatmul.f32.gmra.mxu3 %v236_v12 }
  0xa9   :  { %529 = vmatmul.f32.gmra.mxu2 %v235_v8 }
  0xab   :  { %v2653_v45 = vpop.f32.mrf.mxu0 }
  0xae   :  { %727 = vmatmul.f32.vlgmr.msrb.gmra.mxu0 %v2287_v2 }
  0xaf   :  { %400 = vmatmul.f32.gmra.mxu1 %v2646_v58 }
  0xb3   :  { %v2657_v50 = vpop.f32.mrf.mxu0  ;;  %v2659_v24 = vpop.f32.mrf.mxu1 }
  0xb4   :  { %v569_v9 = vpop.f32.mrf.mxu3 }
  0xb6   :  { %731 = vmatmul.f32.gmra.mxu0 %v2331_v47 }
  0xb7   :  { %824 = vmatmul.f32.vlgmr.msrb.gmra.mxu1 %v2287_v2 }
  0xbb   :  { %v2663_v25 = vpop.f32.mrf.mxu0  ;;  %v2665_v43 = vpop.f32.mrf.mxu1 }
  0xbc   :  { %v346_v51 = vadd.f32 %v2665_v43, %v2657_v50 }
  0xbe   :  { %735 = vmatmul.f32.gmra.mxu0 %v2389_v19 }
  0xbf   :  { %828 = vmatmul.f32.gmra.mxu1 %v2331_v47 }
  0xc3   :  { %v2669_v14 = vpop.f32.mrf.mxu0  ;;  %v2671_v30 = vpop.f32.mrf.mxu1 }
  0xc6   :  { %739 = vmatmul.f32.gmra.mxu0 %v2421_v16 }
  0xc7   :  { %832 = vmatmul.f32.gmra.mxu1 %v2389_v19 }
  0xcb   :  { %v2675_v26 = vpop.f32.mrf.mxu0  ;;  %v2677_v53 = vpop.f32.mrf.mxu1 }
  0xce   :  { %743 = vmatmul.f32.gmra.mxu0 %v2441_v28 }
  0xcf   :  { %836 = vmatmul.f32.gmra.mxu1 %v2421_v16 }
  0xd3   :  { %v2681_v2 = vpop.f32.mrf.mxu0  ;;  %v2683_v29 = vpop.f32.mrf.mxu1 }
  0xd6   :  { %747 = vmatmul.f32.gmra.mxu0 %v2460_v18 }
  0xd7   :  { %840 = vmatmul.f32.gmra.mxu1 %v2441_v28 }
  0xdb   :  { %v2687_v47 = vpop.f32.mrf.mxu0 }
  0xdc   :  { %v2689_v3 = vpop.f32.mrf.mxu1 }
  0xde   :  { %751 = vmatmul.f32.gmra.mxu0 %v2480_v52 }
  0xdf   :  { %844 = vmatmul.f32.gmra.mxu1 %v2460_v18 }
  0xe3   :  { %v2693_v19 = vpop.f32.mrf.mxu0 }
  0xe4   :  { %v2695_v4 = vpop.f32.mrf.mxu1 }
  0xe6   :  { %755 = vmatmul.f32.gmra.mxu0 %v2500_v15 }
  0xe7   :  { %848 = vmatmul.f32.gmra.mxu1 %v2480_v52 }
  0xeb   :  { %v2699_v16 = vpop.f32.mrf.mxu0 }
  0xec   :  { %v2701_v33 = vpop.f32.mrf.mxu1 }
  0xee   :  { %759 = vmatmul.f32.gmra.mxu0 %v2520_v31 }
  0xef   :  { %852 = vmatmul.f32.gmra.mxu1 %v2500_v15  ;;  %v455_v15 = vpop.f32.mrf.mxu2 }
  0xf3   :  { %v2705_v28 = vpop.f32.mrf.mxu0 }
  0xf4   :  { %v2707_v38 = vpop.f32.mrf.mxu1 }
  0xf6   :  { %763 = vmatmul.f32.gmra.mxu0 %v2540_v1 }
  0xf7   :  { %856 = vmatmul.f32.gmra.mxu1 %v2520_v31  ;;  %v460_v54 = vpop.f32.mrf.mxu2 }
  0xfb   :  { %v2711_v18 = vpop.f32.mrf.mxu0 }
  0xfc   :  { %v2713_v34 = vpop.f32.mrf.mxu1 }
  0xfe   :  { %767 = vmatmul.f32.gmra.mxu0 %v2560_v60 }
  0xff   :  { %860 = vmatmul.f32.gmra.mxu1 %v2540_v1  ;;  %v465_v11 = vpop.f32.mrf.mxu2 }
 0x103   :  { %v2717_v52 = vpop.f32.mrf.mxu0 }
 0x104   :  { %v2719_v59 = vpop.f32.mrf.mxu1 }
 0x106   :  { %771 = vmatmul.f32.gmra.mxu0 %v2580_v7 }
 0x107   :  { %864 = vmatmul.f32.gmra.mxu1 %v2560_v60  ;;  %v575_v60 = vpop.f32.mrf.mxu3  ;;  %v470_v27 = vpop.f32.mrf.mxu2 }
 0x10b   :  { %v2723_v6 = vpop.f32.mrf.mxu0 }
 0x10c   :  { %v2725_v31 = vpop.f32.mrf.mxu1 }
 0x10e   :  { %775 = vmatmul.f32.gmra.mxu0 %v2600_v48 }
 0x10f   :  { %868 = vmatmul.f32.gmra.mxu1 %v2580_v7  ;;  %v581_v7 = vpop.f32.mrf.mxu3  ;;  %v475_v63 = vpop.f32.mrf.mxu2 }
 0x113   :  { %v2729_v41 = vpop.f32.mrf.mxu0 }
 0x114   :  { %v2731_v1 = vpop.f32.mrf.mxu1 }
 0x116   :  { %779 = vmatmul.f32.gmra.mxu0 %v2618_v0 }
 0x117   :  { %872 = vmatmul.f32.gmra.mxu1 %v2600_v48  ;;  %v342_v48 = vadd.f32 %v2659_v24, %v2653_v45  ;;  %v587_v22 = vpop.f32.mrf.mxu3  ;;  %v3132_v45 = vld [vmem:[#allocation20_spill] sm:$0xff] }
 0x119   :  { %v456_v39 = vadd.f32 %v455_v15, %v342_v48  ;;  %v350_v15 = vadd.f32 %v2671_v30, %v2663_v25 }
 0x11b   :  { %v2735_v61 = vpop.f32.mrf.mxu0 }
 0x11c   :  { %v2737_v10 = vpop.f32.mrf.mxu1 }
 0x11e   :  { %783 = vmatmul.f32.gmra.mxu0 %v2633_v40 }
 0x11f   :  { %876 = vmatmul.f32.gmra.mxu1 %v2618_v0  ;;  %v570_v0 = vadd.f32 %v569_v9, %v456_v39  ;;  %v593_v23 = vpop.f32.mrf.mxu3  ;;  %v480_v39 = vpop.f32.mrf.mxu2 }
 0x123   :  { %v2741_v17 = vpop.f32.mrf.mxu0 }
 0x124   :  { %v2743_v21 = vpop.f32.mrf.mxu1 }
 0x126   :  { %787 = vmatmul.f32.gmra.mxu0 %v2646_v58 }
 0x127   :  { %880 = vmatmul.f32.gmra.mxu1 %v2633_v40  ;;  %v461_v40 = vadd.f32 %v460_v54, %v346_v51  ;;  %v3133_v51 = vld [vmem:[#allocation24_spill] sm:$0xff] }
 0x129   :  { %v576_v55 = vadd.f32 %v575_v60, %v461_v40 }
 0x12b   :  { %v728_v46 = vpop.f32.mrf.mxu0 }
 0x12c   :  { %v2749_v42 = vpop.f32.mrf.mxu1  ;;  %v729_v8 = vadd.f32 %v728_v46, %v570_v0  ;;  %v466_v46 = vadd.f32 %v465_v11, %v350_v15 }
 0x12e   :  { %v582_v30 = vadd.f32 %v581_v7, %v466_v46 }
 0x12f   :  { %884 = vmatmul.f32.gmra.mxu1 %v2646_v58 }
 0x133   :  { %v732_v56 = vpop.f32.mrf.mxu0 }
 0x134   :  { %v825_v12 = vpop.f32.mrf.mxu1  ;;  %v733_v9 = vadd.f32 %v732_v56, %v576_v55  ;;  %v354_v55 = vadd.f32 %v2677_v53, %v2669_v14  ;;  %v485_v14 = vpop.f32.mrf.mxu2  ;;  %v3134_v53 = vld [vmem:[#allocation27_spill] sm:$0xff] }
 0x135   :  { %v826_v36 = vadd.f32 %v825_v12, %v729_v8  ;;  %v599_v8 = vpop.f32.mrf.mxu3 }
 0x137   :  { %v2755_v24 = vsub.f32 %v3132_v45, %v826_v36 }
 0x139   :  { %v904_v58 = vmul.f32 %v2755_v24, %v2755_v24 }
 0x13b   :  { %v2761_v48 = vand.u32 4294901760, %v904_v58  ;;  %v736_v50 = vpop.f32.mrf.mxu0 }
 0x13c   :  { %v829_v43 = vpop.f32.mrf.mxu1  ;;  %v737_v12 = vadd.f32 %v736_v50, %v582_v30  ;;  %v358_v50 = vadd.f32 %v2683_v29, %v2675_v26 }
 0x13d   :  { %v830_v54 = vadd.f32 %v829_v43, %v733_v9  ;;  %1178 = vmatmul.f32.vlgmr.msrb.gmra.mxu3 %v2761_v48  ;;  %v953_v0 = vsub.f32 %v904_v58, %v2761_v48  ;;  %v471_v58 = vadd.f32 %v470_v27, %v354_v55 }
 0x13f   :  { %v2766_v60 = vsub.f32 %v3133_v51, %v830_v54  ;;  %1292 = vmatmul.f32.vlgmr.msra.gmra.mxu0 %v953_v0  ;;  %v954_v25 = vand.u32 4294901760, %v953_v0  ;;  %v588_v54 = vadd.f32 %v587_v22, %v471_v58  ;;  %v605_v51 = vpop.f32.mrf.mxu3  ;;  %v490_v58 = vpop.f32.mrf.mxu2 }
 0x141   :  { %v905_v56 = vmul.f32 %v2766_v60, %v2766_v60  ;;  %1406 = vmatmul.f32.vlgmr.msra.gmra.mxu1 %v954_v25  ;;  %v955_v11 = vsub.f32 %v953_v0, %v954_v25 }
 0x143   :  { %v956_v40 = vand.u32 4294901760, %v955_v11  ;;  %v2772_v36 = vand.u32 4294901760, %v905_v56  ;;  %v740_v45 = vpop.f32.mrf.mxu0 }
 0x144   :  { %v833_v15 = vpop.f32.mrf.mxu1  ;;  %v741_v25 = vadd.f32 %v740_v45, %v588_v54  ;;  %v362_v45 = vadd.f32 %v2689_v3, %v2681_v2 }
 0x145   :  { %v834_v9 = vadd.f32 %v833_v15, %v737_v12  ;;  %957 = vmatmul.f32.vlgmr.msrb.gmra.mxu2 %v956_v40  ;;  %1182 = vmatmul.f32.gmra.mxu3 %v2772_v36  ;;  %v961_v7 = vsub.f32 %v905_v56, %v2772_v36  ;;  %v476_v12 = vadd.f32 %v475_v63, %v358_v50 }
 0x147   :  { %v2777_v43 = vsub.f32 %v3134_v53, %v834_v9  ;;  %1297 = vmatmul.f32.gmra.mxu0 %v961_v7  ;;  %v962_v46 = vand.u32 4294901760, %v961_v7  ;;  %v594_v15 = vadd.f32 %v593_v23, %v476_v12 }
 0x149   :  { %v906_v0 = vmul.f32 %v2777_v43, %v2777_v43  ;;  %1412 = vmatmul.f32.gmra.mxu1 %v962_v46  ;;  %v963_v27 = vsub.f32 %v961_v7, %v962_v46 }
 0x14b   :  { %v964_v30 = vand.u32 4294901760, %v963_v27  ;;  %v2783_v55 = vand.u32 4294901760, %v906_v0  ;;  %v744_v56 = vpop.f32.mrf.mxu0 }
 0x14c   :  { %v837_v11 = vpop.f32.mrf.mxu1  ;;  %v745_v7 = vadd.f32 %v744_v56, %v594_v15 }
 0x14d   :  { %v838_v40 = vadd.f32 %v837_v11, %v741_v25  ;;  %965 = vmatmul.f32.gmra.mxu2 %v964_v30  ;;  %1186 = vmatmul.f32.gmra.mxu3 %v2783_v55  ;;  %v969_v22 = vsub.f32 %v906_v0, %v2783_v55  ;;  %v611_v0 = vpop.f32.mrf.mxu3  ;;  %v366_v30 = vadd.f32 %v2695_v4, %v2687_v47  ;;  %v495_v11 = vpop.f32.mrf.mxu2 }
 0x14f   :  { %v2788_v26 = vsub.f32 %v2412_v32, %v838_v40  ;;  %1302 = vmatmul.f32.gmra.mxu0 %v969_v22  ;;  %v970_v29 = vand.u32 4294901760, %v969_v22  ;;  %v481_v32 = vadd.f32 %v480_v39, %v362_v45 }
 0x151   :  { %v907_v9 = vmul.f32 %v2788_v26, %v2788_v26  ;;  %1418 = vmatmul.f32.gmra.mxu1 %v970_v29  ;;  %v971_v63 = vsub.f32 %v969_v22, %v970_v29  ;;  %v600_v25 = vadd.f32 %v599_v8, %v481_v32 }
 0x153   :  { %v972_v53 = vand.u32 4294901760, %v971_v63  ;;  %v2794_v46 = vand.u32 4294901760, %v907_v9  ;;  %v748_v54 = vpop.f32.mrf.mxu0 }
 0x154   :  { %v841_v50 = vpop.f32.mrf.mxu1  ;;  %v749_v12 = vadd.f32 %v748_v54, %v600_v25 }
 0x155   :  { %v842_v27 = vadd.f32 %v841_v50, %v745_v7  ;;  %973 = vmatmul.f32.gmra.mxu2 %v972_v53  ;;  %1190 = vmatmul.f32.gmra.mxu3 %v2794_v46  ;;  %v977_v2 = vsub.f32 %v907_v9, %v2794_v46  ;;  %v617_v47 = vpop.f32.mrf.mxu3  ;;  %v370_v7 = vadd.f32 %v2701_v33, %v2693_v19  ;;  %v3135_v19 = vld [vmem:[#allocation28_spill] sm:$0xff] }
 0x157   :  { %v2799_v3 = vsub.f32 %v2435_v37, %v842_v27  ;;  %1307 = vmatmul.f32.gmra.mxu0 %v977_v2  ;;  %v978_v23 = vand.u32 4294901760, %v977_v2  ;;  %v486_v37 = vadd.f32 %v485_v14, %v366_v30 }
 0x159   :  { %v908_v56 = vmul.f32 %v2799_v3, %v2799_v3  ;;  %1424 = vmatmul.f32.gmra.mxu1 %v978_v23  ;;  %v979_v39 = vsub.f32 %v977_v2, %v978_v23  ;;  %v606_v63 = vadd.f32 %v605_v51, %v486_v37  ;;  %v491_v23 = vadd.f32 %v490_v58, %v370_v7 }
 0x15b   :  { %v980_v40 = vand.u32 4294901760, %v979_v39  ;;  %v2805_v22 = vand.u32 4294901760, %v908_v56  ;;  %v752_v29 = vpop.f32.mrf.mxu0  ;;  %v374_v39 = vadd.f32 %v2707_v38, %v2699_v16  ;;  %v3136_v38 = vld [vmem:[#allocation29_spill] sm:$0xff] }
 0x15c   :  { %v845_v15 = vpop.f32.mrf.mxu1  ;;  %v753_v54 = vadd.f32 %v752_v29, %v606_v63 }
 0x15d   :  { %v846_v45 = vadd.f32 %v845_v15, %v749_v12  ;;  %981 = vmatmul.f32.gmra.mxu2 %v980_v40  ;;  %1194 = vmatmul.f32.gmra.mxu3 %v2805_v22  ;;  %v985_v8 = vsub.f32 %v908_v56, %v2805_v22  ;;  %v612_v56 = vadd.f32 %v611_v0, %v491_v23  ;;  %v623_v12 = vpop.f32.mrf.mxu3 }
 0x15f   :  { %v2810_v4 = vsub.f32 %v2453_v44, %v846_v45  ;;  %1312 = vmatmul.f32.gmra.mxu0 %v985_v8  ;;  %v986_v9 = vand.u32 4294901760, %v985_v8  ;;  %v500_v44 = vpop.f32.mrf.mxu2 }
 0x161   :  { %v909_v53 = vmul.f32 %v2810_v4, %v2810_v4  ;;  %1430 = vmatmul.f32.gmra.mxu1 %v986_v9  ;;  %v987_v14 = vsub.f32 %v985_v8, %v986_v9  ;;  %v496_v9 = vadd.f32 %v495_v11, %v374_v39 }
 0x163   :  { %v988_v50 = vand.u32 4294901760, %v987_v14  ;;  %v2816_v32 = vand.u32 4294901760, %v909_v53  ;;  %v756_v27 = vpop.f32.mrf.mxu0  ;;  %v618_v14 = vadd.f32 %v617_v47, %v496_v9 }
 0x164   :  { %v849_v2 = vpop.f32.mrf.mxu1  ;;  %v757_v29 = vadd.f32 %v756_v27, %v612_v56 }
 0x165   :  { %v850_v25 = vadd.f32 %v849_v2, %v753_v54  ;;  %989 = vmatmul.f32.gmra.mxu2 %v988_v50  ;;  %1198 = vmatmul.f32.gmra.mxu3 %v2816_v32  ;;  %v993_v51 = vsub.f32 %v909_v53, %v2816_v32  ;;  %v378_v54 = vadd.f32 %v2713_v34, %v2705_v28  ;;  %v629_v27 = vpop.f32.mrf.mxu3 }
 0x167   :  { %v2821_v33 = vsub.f32 %v3135_v19, %v850_v25  ;;  %1317 = vmatmul.f32.gmra.mxu0 %v993_v51  ;;  %v994_v30 = vand.u32 4294901760, %v993_v51  ;;  %v505_v16 = vpop.f32.mrf.mxu2 }
 0x169   :  { %v910_v58 = vmul.f32 %v2821_v33, %v2821_v33  ;;  %1436 = vmatmul.f32.gmra.mxu1 %v994_v30  ;;  %v995_v40 = vsub.f32 %v993_v51, %v994_v30  ;;  %v501_v30 = vadd.f32 %v500_v44, %v378_v54 }
 0x16b   :  { %v996_v15 = vand.u32 4294901760, %v995_v40  ;;  %v2827_v37 = vand.u32 4294901760, %v910_v58  ;;  %v760_v45 = vpop.f32.mrf.mxu0  ;;  %v624_v39 = vadd.f32 %v623_v12, %v501_v30 }
 0x16c   :  { %v853_v8 = vpop.f32.mrf.mxu1  ;;  %v761_v2 = vadd.f32 %v760_v45, %v618_v14  ;;  %v386_v14 = vadd.f32 %v2725_v31, %v2717_v52 }
 0x16d   :  { %v854_v63 = vadd.f32 %v853_v8, %v757_v29  ;;  %997 = vmatmul.f32.gmra.mxu2 %v996_v15  ;;  %1202 = vmatmul.f32.gmra.mxu3 %v2827_v37  ;;  %v1001_v0 = vsub.f32 %v910_v58, %v2827_v37  ;;  %v382_v58 = vadd.f32 %v2719_v59, %v2711_v18  ;;  %v635_v18 = vpop.f32.mrf.mxu3 }
 0x16f   :  { %v2832_v7 = vsub.f32 %v3136_v38, %v854_v63  ;;  %1322 = vmatmul.f32.gmra.mxu0 %v1001_v0  ;;  %v1002_v53 = vand.u32 4294901760, %v1001_v0  ;;  %v510_v40 = vpop.f32.mrf.mxu2 }
 0x171   :  { %v911_v50 = vmul.f32 %v2832_v7, %v2832_v7  ;;  %1442 = vmatmul.f32.gmra.mxu1 %v1002_v53  ;;  %v1003_v11 = vsub.f32 %v1001_v0, %v1002_v53 }
 0x173   :  { %v1004_v23 = vand.u32 4294901760, %v1003_v11  ;;  %v2838_v25 = vand.u32 4294901760, %v911_v50  ;;  %v764_v51 = vpop.f32.mrf.mxu0 }
 0x174   :  { %v857_v19 = vpop.f32.mrf.mxu1  ;;  %v765_v15 = vadd.f32 %v764_v51, %v624_v39 }
 0x175   :  { %v858_v56 = vadd.f32 %v857_v19, %v761_v2  ;;  %1005 = vmatmul.f32.gmra.mxu2 %v1004_v23  ;;  %1206 = vmatmul.f32.gmra.mxu3 %v2838_v25  ;;  %v1009_v47 = vsub.f32 %v911_v50, %v2838_v25 }
 0x177   :  { %v2843_v28 = vsub.f32 %v2513_v49, %v858_v56  ;;  %1327 = vmatmul.f32.gmra.mxu0 %v1009_v47  ;;  %v1010_v34 = vand.u32 4294901760, %v1009_v47  ;;  %v506_v49 = vadd.f32 %v505_v16, %v382_v58  ;;  %v515_v50 = vpop.f32.mrf.mxu2  ;;  %v641_v56 = vpop.f32.mrf.mxu3 }
 0x179   :  { %v912_v29 = vmul.f32 %v2843_v28, %v2843_v28  ;;  %1448 = vmatmul.f32.gmra.mxu1 %v1010_v34  ;;  %v1011_v44 = vsub.f32 %v1009_v47, %v1010_v34  ;;  %v630_v53 = vadd.f32 %v629_v27, %v506_v49  ;;  %v390_v34 = vadd.f32 %v2731_v1, %v2723_v6 }
 0x17b   :  { %v2849_v45 = vand.u32 4294901760, %v912_v29  ;;  %v1012_v8 = vand.u32 4294901760, %v1011_v44  ;;  %v768_v9 = vpop.f32.mrf.mxu0 }
 0x17c   :  { %v861_v63 = vpop.f32.mrf.mxu1  ;;  %v769_v11 = vadd.f32 %v768_v9, %v630_v53 }
 0x17d   :  { %v862_v0 = vadd.f32 %v861_v63, %v765_v15  ;;  %1013 = vmatmul.f32.gmra.mxu2 %v1012_v8  ;;  %1210 = vmatmul.f32.gmra.mxu3 %v2849_v45  ;;  %v1017_v12 = vsub.f32 %v912_v29, %v2849_v45 }
 0x17f   :  { %v2854_v59 = vsub.f32 %v2533_v57, %v862_v0  ;;  %1332 = vmatmul.f32.gmra.mxu0 %v1017_v12  ;;  %v1018_v38 = vand.u32 4294901760, %v1017_v12  ;;  %v511_v57 = vadd.f32 %v510_v40, %v386_v14  ;;  %v520_v49 = vpop.f32.mrf.mxu2  ;;  %v647_v53 = vpop.f32.mrf.mxu3 }
 0x181   :  { %v913_v54 = vmul.f32 %v2854_v59, %v2854_v59  ;;  %1454 = vmatmul.f32.gmra.mxu1 %v1018_v38  ;;  %v1019_v16 = vsub.f32 %v1017_v12, %v1018_v38  ;;  %v636_v47 = vadd.f32 %v635_v18, %v511_v57  ;;  %v394_v12 = vadd.f32 %v2737_v10, %v2729_v41 }
 0x183   :  { %v2860_v2 = vand.u32 4294901760, %v913_v54  ;;  %v1020_v23 = vand.u32 4294901760, %v1019_v16  ;;  %v772_v51 = vpop.f32.mrf.mxu0 }
 0x184   :  { %v865_v19 = vpop.f32.mrf.mxu1  ;;  %v773_v40 = vadd.f32 %v772_v51, %v636_v47 }
 0x185   :  { %v866_v30 = vadd.f32 %v865_v19, %v769_v11  ;;  %1021 = vmatmul.f32.gmra.mxu2 %v1020_v23  ;;  %1214 = vmatmul.f32.gmra.mxu3 %v2860_v2  ;;  %v1025_v27 = vsub.f32 %v913_v54, %v2860_v2 }
 0x187   :  { %v2865_v52 = vsub.f32 %v2553_v62, %v866_v30  ;;  %1337 = vmatmul.f32.gmra.mxu0 %v1025_v27  ;;  %v1026_v31 = vand.u32 4294901760, %v1025_v27  ;;  %v516_v62 = vadd.f32 %v515_v50, %v390_v34  ;;  %v525_v19 = vpop.f32.mrf.mxu2  ;;  %v398_v30 = vadd.f32 %v2743_v21, %v2735_v61 }
 0x189   :  { %v914_v39 = vmul.f32 %v2865_v52, %v2865_v52  ;;  %1460 = vmatmul.f32.gmra.mxu1 %v1026_v31  ;;  %v1027_v58 = vsub.f32 %v1025_v27, %v1026_v31  ;;  %v642_v0 = vadd.f32 %v641_v56, %v516_v62  ;;  %v402_v62 = vadd.f32 %v2749_v42, %v2741_v17 }
 0x18b   :  { %v2871_v29 = vand.u32 4294901760, %v914_v39  ;;  %v1028_v44 = vand.u32 4294901760, %v1027_v58  ;;  %v776_v15 = vpop.f32.mrf.mxu0 }
 0x18c   :  { %v869_v8 = vpop.f32.mrf.mxu1  ;;  %v777_v14 = vadd.f32 %v776_v15, %v642_v0 }
 0x18d   :  { %v870_v9 = vadd.f32 %v869_v8, %v773_v40  ;;  %1029 = vmatmul.f32.gmra.mxu2 %v1028_v44  ;;  %1218 = vmatmul.f32.gmra.mxu3 %v2871_v29  ;;  %v1033_v63 = vsub.f32 %v914_v39, %v2871_v29  ;;  %v653_v39 = vpop.f32.mrf.mxu3 }
 0x18f   :  { %v2876_v6 = vsub.f32 %v2573_v20, %v870_v9  ;;  %1342 = vmatmul.f32.gmra.mxu0 %v1033_v63  ;;  %v1034_v1 = vand.u32 4294901760, %v1033_v63  ;;  %v521_v20 = vadd.f32 %v520_v49, %v394_v12  ;;  %v530_v49 = vpop.f32.mrf.mxu2 }
 0x191   :  { %v915_v18 = vmul.f32 %v2876_v6, %v2876_v6  ;;  %1466 = vmatmul.f32.gmra.mxu1 %v1034_v1  ;;  %v1035_v38 = vsub.f32 %v1033_v63, %v1034_v1  ;;  %v648_v57 = vadd.f32 %v647_v53, %v521_v20 }
 0x193   :  { %v2882_v54 = vand.u32 4294901760, %v915_v18  ;;  %v1036_v16 = vand.u32 4294901760, %v1035_v38  ;;  %v780_v50 = vpop.f32.mrf.mxu0  ;;  %v531_v38 = vadd.f32 %v530_v49, %v402_v62 }
 0x194   :  { %v873_v11 = vpop.f32.mrf.mxu1  ;;  %v781_v56 = vadd.f32 %v780_v50, %v648_v57 }
 0x195   :  { %v874_v23 = vadd.f32 %v873_v11, %v777_v14  ;;  %1037 = vmatmul.f32.gmra.mxu2 %v1036_v16  ;;  %1222 = vmatmul.f32.gmra.mxu3 %v2882_v54  ;;  %v1041_v51 = vsub.f32 %v915_v18, %v2882_v54  ;;  %v659_v14 = vpop.f32.mrf.mxu3 }
 0x196   :  { %v660_v50 = vadd.f32 %v659_v14, %v531_v38 }
 0x197   :  { %v2887_v41 = vsub.f32 %v2593_v5, %v874_v23  ;;  %1347 = vmatmul.f32.gmra.mxu0 %v1041_v51  ;;  %v1042_v10 = vand.u32 4294901760, %v1041_v51  ;;  %v526_v5 = vadd.f32 %v525_v19, %v398_v30  ;;  %v3137_v30 = vld [vmem:[#allocation26_spill] sm:$0xff] }
 0x199   :  { %v916_v27 = vmul.f32 %v2887_v41, %v2887_v41  ;;  %1472 = vmatmul.f32.gmra.mxu1 %v1042_v10  ;;  %v1043_v31 = vsub.f32 %v1041_v51, %v1042_v10  ;;  %v654_v8 = vadd.f32 %v653_v39, %v526_v5 }
 0x19b   :  { %v2893_v47 = vand.u32 4294901760, %v916_v27  ;;  %v1044_v34 = vand.u32 4294901760, %v1043_v31  ;;  %v784_v15 = vpop.f32.mrf.mxu0 }
 0x19c   :  { %v877_v58 = vpop.f32.mrf.mxu1  ;;  %v785_v1 = vadd.f32 %v784_v15, %v654_v8 }
 0x19d   :  { %v878_v40 = vadd.f32 %v877_v58, %v781_v56  ;;  %1045 = vmatmul.f32.gmra.mxu2 %v1044_v34  ;;  %1226 = vmatmul.f32.gmra.mxu3 %v2893_v47  ;;  %v1049_v44 = vsub.f32 %v916_v27, %v2893_v47 }
 0x19f   :  { %v2898_v61 = vsub.f32 %v2612_v35, %v878_v40  ;;  %1352 = vmatmul.f32.gmra.mxu0 %v1049_v44  ;;  %v1050_v21 = vand.u32 4294901760, %v1049_v44 }
 0x1a1   :  { %v917_v9 = vmul.f32 %v2898_v61, %v2898_v61  ;;  %1478 = vmatmul.f32.gmra.mxu1 %v1050_v21  ;;  %v1051_v63 = vsub.f32 %v1049_v44, %v1050_v21 }
 0x1a3   :  { %v2904_v0 = vand.u32 4294901760, %v917_v9  ;;  %v1052_v12 = vand.u32 4294901760, %v1051_v63  ;;  %v788_v16 = vpop.f32.mrf.mxu0 }
 0x1a4   :  { %v881_v18 = vpop.f32.mrf.mxu1  ;;  %v789_v23 = vadd.f32 %v788_v16, %v660_v50 }
 0x1a5   :  { %v882_v35 = vadd.f32 %v881_v18, %v785_v1  ;;  %1053 = vmatmul.f32.gmra.mxu2 %v1052_v12  ;;  %1230 = vmatmul.f32.gmra.mxu3 %v2904_v0  ;;  %v1057_v53 = vsub.f32 %v917_v9, %v2904_v0 }
 0x1a7   :  { %v2909_v17 = vsub.f32 %v2627_v13, %v882_v35  ;;  %1357 = vmatmul.f32.gmra.mxu0 %v1057_v53  ;;  %v1058_v42 = vand.u32 4294901760, %v1057_v53 }
 0x1a9   :  { %v918_v11 = vmul.f32 %v2909_v17, %v2909_v17  ;;  %1484 = vmatmul.f32.gmra.mxu1 %v1058_v42  ;;  %v1059_v20 = vsub.f32 %v1057_v53, %v1058_v42 }
 0x1ab   :  { %v2913_v51 = vand.u32 4294901760, %v918_v11  ;;  %v1060_v10 = vand.u32 4294901760, %v1059_v20 }
 0x1ac   :  { %v885_v19 = vpop.f32.mrf.mxu1 }
 0x1ad   :  { %v886_v57 = vadd.f32 %v885_v19, %v789_v23  ;;  %1061 = vmatmul.f32.gmra.mxu2 %v1060_v10  ;;  %1234 = vmatmul.f32.gmra.mxu3 %v2913_v51  ;;  %v1065_v13 = vsub.f32 %v918_v11, %v2913_v51 }
 0x1af   :  { %v2918_v27 = vsub.f32 %v3137_v30, %v886_v57  ;;  %1362 = vmatmul.f32.gmra.mxu0 %v1065_v13  ;;  %v1066_v31 = vand.u32 4294901760, %v1065_v13 }
 0x1b1   :  { %v919_v56 = vmul.f32 %v2918_v27, %v2918_v27  ;;  %1490 = vmatmul.f32.gmra.mxu1 %v1066_v31  ;;  %v1067_v34 = vsub.f32 %v1065_v13, %v1066_v31 }
 0x1b3   :  { %v2922_v39 = vand.u32 4294901760, %v919_v56  ;;  %v1068_v58 = vand.u32 4294901760, %v1067_v34 }
 0x1b5   :  { %1069 = vmatmul.f32.gmra.mxu2 %v1068_v58  ;;  %1238 = vmatmul.f32.gmra.mxu3 %v2922_v39  ;;  %v1073_v5 = vsub.f32 %v919_v56, %v2922_v39 }
 0x1b7   :  { %1367 = vmatmul.f32.gmra.mxu0 %v1073_v5  ;;  %v1074_v40 = vand.u32 4294901760, %v1073_v5 }
 0x1b9   :  { %1496 = vmatmul.f32.gmra.mxu1 %v1074_v40  ;;  %v1075_v44 = vsub.f32 %v1073_v5, %v1074_v40 }
 0x1bb   :  { %v1076_v15 = vand.u32 4294901760, %v1075_v44 }
 0x1bd   :  { %1077 = vmatmul.f32.gmra.mxu2 %v1076_v15  ;;  %1662 = vmatmul.f32.vlgmr.msra.gmra.mxu3 %v2761_v48 }
 0x1c0   :  { %v1179_v21 = vpop.f32.mrf.mxu3 }
 0x1c5   :  { %1565 = vmatmul.f32.vlgmr.msra.gmra.mxu2 %v2761_v48  ;;  %1666 = vmatmul.f32.gmra.mxu3 %v2772_v36 }
 0x1c8   :  { %v958_v8 = vpop.f32.mrf.mxu2  ;;  %v1183_v62 = vpop.f32.mrf.mxu3 }
 0x1c9   :  { %v959_v9 = vadd.f32 1e-05, %v958_v8 }
 0x1cb   :  { %v2929_v63 = vadd.f32 %v1179_v21, %v959_v9 }
 0x1cd   :  { %1569 = vmatmul.f32.gmra.mxu2 %v2772_v36  ;;  %1670 = vmatmul.f32.gmra.mxu3 %v2783_v55 }
 0x1d0   :  { %v966_v49 = vpop.f32.mrf.mxu2  ;;  %v1187_v1 = vpop.f32.mrf.mxu3 }
 0x1d1   :  { %v967_v12 = vadd.f32 1e-05, %v966_v49 }
 0x1d3   :  { %v2933_v18 = vadd.f32 %v1183_v62, %v967_v12  ;;  %v1293_v12 = vpop.f32.mrf.mxu0 }
 0x1d5   :  { %1573 = vmatmul.f32.gmra.mxu2 %v2783_v55  ;;  %1674 = vmatmul.f32.gmra.mxu3 %v2794_v46 }
 0x1d8   :  { %v974_v48 = vpop.f32.mrf.mxu2  ;;  %v1191_v38 = vpop.f32.mrf.mxu3 }
 0x1d9   :  { %v975_v35 = vadd.f32 1e-05, %v974_v48 }
 0x1db   :  { %v2937_v53 = vadd.f32 %v1187_v1, %v975_v35 }
 0x1dd   :  { %1577 = vmatmul.f32.gmra.mxu2 %v2794_v46  ;;  %1678 = vmatmul.f32.gmra.mxu3 %v2805_v22 }
 0x1e0   :  { %v982_v36 = vpop.f32.mrf.mxu2  ;;  %v1195_v14 = vpop.f32.mrf.mxu3 }
 0x1e1   :  { %v983_v42 = vadd.f32 1e-05, %v982_v36 }
 0x1e3   :  { %v2941_v16 = vadd.f32 %v1191_v38, %v983_v42  ;;  %v1298_v42 = vpop.f32.mrf.mxu0 }
 0x1e5   :  { %1581 = vmatmul.f32.gmra.mxu2 %v2805_v22  ;;  %1682 = vmatmul.f32.gmra.mxu3 %v2816_v32 }
 0x1e8   :  { %v990_v55 = vpop.f32.mrf.mxu2  ;;  %v1199_v50 = vpop.f32.mrf.mxu3 }
 0x1e9   :  { %v991_v11 = vadd.f32 1e-05, %v990_v55 }
 0x1eb   :  { %v2945_v20 = vadd.f32 %v1195_v14, %v991_v11 }
 0x1ed   :  { %1585 = vmatmul.f32.gmra.mxu2 %v2816_v32  ;;  %1686 = vmatmul.f32.gmra.mxu3 %v2827_v37 }
 0x1f0   :  { %v998_v46 = vpop.f32.mrf.mxu2  ;;  %v1203_v23 = vpop.f32.mrf.mxu3 }
 0x1f1   :  { %v999_v10 = vadd.f32 1e-05, %v998_v46 }
 0x1f3   :  { %v2949_v19 = vadd.f32 %v1199_v50, %v999_v10 }
 0x1f5   :  { %1589 = vmatmul.f32.gmra.mxu2 %v2827_v37  ;;  %1690 = vmatmul.f32.gmra.mxu3 %v2838_v25 }
 0x1f8   :  { %v1006_v22 = vpop.f32.mrf.mxu2  ;;  %v1207_v57 = vpop.f32.mrf.mxu3 }
 0x1f9   :  { %v1007_v13 = vadd.f32 1e-05, %v1006_v22 }
 0x1fb   :  { %v2953_v30 = vadd.f32 %v1203_v23, %v1007_v13 }
 0x1fd   :  { %1593 = vmatmul.f32.gmra.mxu2 %v2838_v25  ;;  %1694 = vmatmul.f32.gmra.mxu3 %v2849_v45 }
 0x200   :  { %v1014_v32 = vpop.f32.mrf.mxu2  ;;  %v1211_v31 = vpop.f32.mrf.mxu3 }
 0x201   :  { %v1015_v56 = vadd.f32 1e-05, %v1014_v32 }
 0x203   :  { %v2957_v34 = vadd.f32 %v1207_v57, %v1015_v56 }
 0x205   :  { %1597 = vmatmul.f32.gmra.mxu2 %v2849_v45  ;;  %1698 = vmatmul.f32.gmra.mxu3 %v2860_v2 }
 0x208   :  { %v1022_v37 = vpop.f32.mrf.mxu2  ;;  %v1215_v58 = vpop.f32.mrf.mxu3 }
 0x209   :  { %v1023_v5 = vadd.f32 1e-05, %v1022_v37 }
 0x20b   :  { %v2961_v40 = vadd.f32 %v1211_v31, %v1023_v5 }
 0x20d   :  { %1601 = vmatmul.f32.gmra.mxu2 %v2860_v2  ;;  %1702 = vmatmul.f32.gmra.mxu3 %v2871_v29 }
 0x210   :  { %v1030_v25 = vpop.f32.mrf.mxu2  ;;  %v1219_v44 = vpop.f32.mrf.mxu3 }
 0x211   :  { %v1031_v15 = vadd.f32 1e-05, %v1030_v25 }
 0x213   :  { %v2965_v21 = vadd.f32 %v1215_v58, %v1031_v15  ;;  %v1294_v58 = vadd.f32 %v1293_v12, %v2929_v63 }
 0x215   :  { %1605 = vmatmul.f32.gmra.mxu2 %v2871_v29  ;;  %1706 = vmatmul.f32.gmra.mxu3 %v2882_v54  ;;  %v1407_v29 = vpop.f32.mrf.mxu1 }
 0x216   :  { %v1408_v5 = vadd.f32 %v1407_v29, %v1294_v58 }
 0x218   :  { %v1038_v45 = vpop.f32.mrf.mxu2  ;;  %v1223_v8 = vpop.f32.mrf.mxu3 }
 0x219   :  { %v1039_v62 = vadd.f32 1e-05, %v1038_v45 }
 0x21b   :  { %v2969_v9 = vadd.f32 %v1219_v44, %v1039_v62  ;;  %v1299_v62 = vadd.f32 %v1298_v42, %v2933_v18 }
 0x21d   :  { %1609 = vmatmul.f32.gmra.mxu2 %v2882_v54  ;;  %1710 = vmatmul.f32.gmra.mxu3 %v2893_v47  ;;  %v1413_v50 = vpop.f32.mrf.mxu1 }
 0x220   :  { %v1046_v2 = vpop.f32.mrf.mxu2  ;;  %v1227_v49 = vpop.f32.mrf.mxu3 }
 0x221   :  { %v1047_v1 = vadd.f32 1e-05, %v1046_v2 }
 0x223   :  { %v2973_v48 = vadd.f32 %v1223_v8, %v1047_v1 }
 0x225   :  { %1613 = vmatmul.f32.gmra.mxu2 %v2893_v47  ;;  %1714 = vmatmul.f32.gmra.mxu3 %v2904_v0  ;;  %v1303_v47 = vpop.f32.mrf.mxu0  ;;  %v1419_v57 = vpop.f32.mrf.mxu1 }
 0x228   :  { %v1054_v38 = vpop.f32.mrf.mxu2  ;;  %v1231_v35 = vpop.f32.mrf.mxu3 }
 0x229   :  { %v1055_v36 = vadd.f32 1e-05, %v1054_v38 }
 0x22b   :  { %v2977_v14 = vadd.f32 %v1227_v49, %v1055_v36 }
 0x22d   :  { %1617 = vmatmul.f32.gmra.mxu2 %v2904_v0  ;;  %1718 = vmatmul.f32.gmra.mxu3 %v2913_v51  ;;  %v1308_v31 = vpop.f32.mrf.mxu0 }
 0x230   :  { %v1062_v54 = vpop.f32.mrf.mxu2  ;;  %v1235_v55 = vpop.f32.mrf.mxu3 }
 0x231   :  { %v1063_v11 = vadd.f32 1e-05, %v1062_v54  ;;  %v1304_v54 = vadd.f32 %v1303_v47, %v2937_v53  ;;  %v2999_v47 = vld [vmem:[%s3075_s2] ss:$0 sm:$0xff]  ;;  %s2099_s2 = smov [#allocation7]  }
 0x233   :  { %v2981_v46 = vadd.f32 %v1231_v35, %v1063_v11 }
 0x235   :  { %1621 = vmatmul.f32.gmra.mxu2 %v2913_v51  ;;  %1722 = vmatmul.f32.gmra.mxu3 %v2922_v39  ;;  %v1425_v51 = vpop.f32.mrf.mxu1  ;;  %v1313_v45 = vpop.f32.mrf.mxu0 }
 0x238   :  { %v1070_v23 = vpop.f32.mrf.mxu2  ;;  %v1239_v10 = vpop.f32.mrf.mxu3 }
 0x239   :  { %v1071_v22 = vadd.f32 1e-05, %v1070_v23 }
 0x23b   :  { %v2985_v13 = vadd.f32 %v1235_v55, %v1071_v22  ;;  %v1420_v55 = vadd.f32 %v1419_v57, %v1304_v54 }
 0x23d   :  { %1625 = vmatmul.f32.gmra.mxu2 %v2922_v39  ;;  %v1431_v2 = vpop.f32.mrf.mxu1  ;;  %v1414_v39 = vadd.f32 %v1413_v50, %v1299_v62  ;;  %v1318_v12 = vpop.f32.mrf.mxu0 }
 0x240   :  { %v1078_v0 = vpop.f32.mrf.mxu2  ;;  %v1663_v32 = vpop.f32.mrf.mxu3 }
 0x241   :  { %v1079_v56 = vadd.f32 1e-05, %v1078_v0 }
 0x243   :  { %v2988_v37 = vadd.f32 %v1239_v10, %v1079_v56 }
 0x245   :  { %v2993_v22 = vpop.f32.mrf.mxu1 }
 0x248   :  { %v1566_v25 = vpop.f32.mrf.mxu2  ;;  %v1667_v44 = vpop.f32.mrf.mxu3 }
 0x249   :  { %v1567_v15 = vadd.f32 %v1566_v25, %v1408_v5  ;;  %v1323_v5 = vpop.f32.mrf.mxu0 }
 0x24b   :  { %v1664_v8 = vadd.f32 %v1663_v32, %v1567_v15  ;;  %v1309_v32 = vadd.f32 %v1308_v31, %v2941_v16 }
 0x24d   :  { %1985 = vrsqrt.f32 %v1664_v8  ;;  %vm1732_vm1 = vweird.f32 %v1664_v8  ;;  %v1426_v16 = vadd.f32 %v1425_v51, %v1309_v32 }
 0x250   :  { %v1570_v49 = vpop.f32.mrf.mxu2  ;;  %v1671_v1 = vpop.f32.mrf.mxu3 }
 0x251   :  { %v1571_v38 = vadd.f32 %v1570_v49, %v1414_v39 }
 0x253   :  { %v1986_v35 = vpop.eup %1985  ;;  %v1668_v36 = vadd.f32 %v1667_v44, %v1571_v38  ;;  %v3005_v44 = vld [vmem:[%s3076_s3] ss:$0 sm:$0xff]  ;;  %v1443_v38 = vpop.f32.mrf.mxu1  ;;  %s1962_s3 = sshll.u32 %s2099_s2, 4  ;;  %s1963_s3 = int_to_ptr.vmem [resolvable:$true] %s1962_s3 }
 0x254   :  { %v1727_v63 = vmul.f32 %v1986_v35, %v1664_v8  ;;  %vm1733_vm0 = vweird.f32 %v1986_v35 }
 0x255   :  { %1987 = vrsqrt.f32 %v1668_v36  ;;  %vm1734_vm2 = vmor %vm1732_vm1, %vm1733_vm0  ;;  %vm1742_vm4 = vweird.f32 %v1668_v36 }
 0x256   :  { %v1728_v29 = vmul.f32 %v1986_v35, %v1727_v63 }
 0x258   :  { %v1729_v11 = vmul.f32 0.5, %v1728_v29  ;;  %v1574_v23 = vpop.f32.mrf.mxu2  ;;  %v1675_v10 = vpop.f32.mrf.mxu3 }
 0x259   :  { %v1575_v18 = vadd.f32 %v1574_v23, %v1420_v55 }
 0x25a   :  { %v1730_v42 = vsub.f32 1.5, %v1729_v11 }
 0x25b   :  { %v1988_v50 = vpop.eup %1987  ;;  %v1672_v0 = vadd.f32 %v1671_v1, %v1575_v18 }
 0x25c   :  { %v1731_v56 = vmul.f32 %v1986_v35, %v1730_v42  ;;  %v1737_v53 = vmul.f32 %v1988_v50, %v1668_v36  ;;  %vm1743_vm3 = vweird.f32 %v1988_v50 }
 0x25d   :  { %1989 = vrsqrt.f32 %v1672_v0  ;;  %vm1744_vm5 = vmor %vm1742_vm4, %vm1743_vm3  ;;  %vm1752_vm7 = vweird.f32 %v1672_v0 }
 0x25e   :  { %v1735_v57 = vsel %vm1734_vm2, %v1986_v35, %v1731_v56  ;;  %v1738_v58 = vmul.f32 %v1988_v50, %v1737_v53  ;;  %v1328_v56 = vpop.f32.mrf.mxu0 }
 0x25f   :  { %v1888_v25 = vmul.f32 %v1735_v57, %v2755_v24  ;;  %v1314_v24 = vadd.f32 %v1313_v45, %v2945_v20 }
 0x260   :  { %v1739_v31 = vmul.f32 0.5, %v1738_v58  ;;  %v1578_v15 = vpop.f32.mrf.mxu2  ;;  %v1679_v8 = vpop.f32.mrf.mxu3  ;;  %v1319_v58 = vadd.f32 %v1318_v12, %v2949_v19 }
 0x261   :  { %v1907_v62 = vmul.f32 %v2999_v47, %v1888_v25  ;;  %v1579_v39 = vadd.f32 %v1578_v15, %v1426_v16  ;;  %v1432_v23 = vadd.f32 %v1431_v2, %v1314_v24 }
 0x262   :  { %v1740_v49 = vsub.f32 1.5, %v1739_v31  ;;  %v1438_v15 = vadd.f32 %v2993_v22, %v1319_v58 }
 0x263   :  { %v1990_v1 = vpop.eup %1989  ;;  %v1926_v35 = vadd.f32 %v3005_v44, %v1907_v62  ;;  %v1676_v54 = vadd.f32 %v1675_v10, %v1579_v39 }
 0x264   :  { %v1741_v63 = vmul.f32 %v1988_v50, %v1740_v49  ;;  %v1747_v29 = vmul.f32 %v1990_v1, %v1672_v0  ;;  %vm1753_vm6 = vweird.f32 %v1990_v1 }
 0x265   :  { %1942 = vst [vmem:[#allocation7] sm:$0xff] %v1926_v35  ;;  %1991 = vrsqrt.f32 %v1676_v54  ;;  %vm1754_vm8 = vmor %vm1752_vm7, %vm1753_vm6  ;;  %vm1762_vm10 = vweird.f32 %v1676_v54 }
 0x266   :  { %v1745_v51 = vsel %vm1744_vm5, %v1988_v50, %v1741_v63  ;;  %v1748_v55 = vmul.f32 %v1990_v1, %v1747_v29  ;;  %v1333_v0 = vpop.f32.mrf.mxu0 }
 0x267   :  { %v1889_v11 = vmul.f32 %v1745_v51, %v2766_v60  ;;  %v1449_v60 = vpop.f32.mrf.mxu1 }
 0x268   :  { %v1749_v18 = vmul.f32 0.5, %v1748_v55  ;;  %v1582_v42 = vpop.f32.mrf.mxu2  ;;  %v1683_v32 = vpop.f32.mrf.mxu3 }
 0x269   :  { %v1908_v53 = vmul.f32 %v2999_v47, %v1889_v11  ;;  %v1583_v10 = vadd.f32 %v1582_v42, %v1432_v23 }
 0x26a   :  { %v1750_v57 = vsub.f32 1.5, %v1749_v18 }
 0x26b   :  { %v1992_v20 = vpop.eup %1991  ;;  %v1927_v45 = vadd.f32 %v3005_v44, %v1908_v53  ;;  %v1680_v36 = vadd.f32 %v1679_v8, %v1583_v10 }
 0x26c   :  { %v1751_v50 = vmul.f32 %v1990_v1, %v1750_v57  ;;  %v1757_v25 = vmul.f32 %v1992_v20, %v1676_v54  ;;  %vm1763_vm9 = vweird.f32 %v1992_v20 }
 0x26d   :  { %1943 = vst [vmem:[#allocation7 + $0x8] sm:$0xff] %v1927_v45  ;;  %1993 = vrsqrt.f32 %v1680_v36  ;;  %vm1764_vm11 = vmor %vm1762_vm10, %vm1763_vm9  ;;  %v1329_v45 = vadd.f32 %v1328_v56, %v2957_v34  ;;  %vm1772_vm13 = vweird.f32 %v1680_v36 }
 0x26e   :  { %v1755_v2 = vsel %vm1754_vm8, %v1990_v1, %v1751_v50  ;;  %v1758_v16 = vmul.f32 %v1992_v20, %v1757_v25  ;;  %v1324_v1 = vadd.f32 %v1323_v5, %v2953_v30  ;;  %v1338_v50 = vpop.f32.mrf.mxu0 }
 0x26f   :  { %v1890_v31 = vmul.f32 %v1755_v2, %v2777_v43  ;;  %v1455_v55 = vpop.f32.mrf.mxu1  ;;  %v1450_v2 = vadd.f32 %v1449_v60, %v1329_v45 }
 0x270   :  { %v1759_v62 = vmul.f32 0.5, %v1758_v16  ;;  %v1586_v39 = vpop.f32.mrf.mxu2  ;;  %v1687_v49 = vpop.f32.mrf.mxu3  ;;  %v1444_v23 = vadd.f32 %v1443_v38, %v1324_v1 }
 0x271   :  { %v1909_v8 = vmul.f32 %v2999_v47, %v1890_v31  ;;  %v1587_v35 = vadd.f32 %v1586_v39, %v1438_v15 }
 0x272   :  { %v1760_v19 = vsub.f32 1.5, %v1759_v62 }
 0x273   :  { %v1994_v12 = vpop.eup %1993  ;;  %v1928_v24 = vadd.f32 %v3005_v44, %v1909_v8  ;;  %v1684_v63 = vadd.f32 %v1683_v32, %v1587_v35  ;;  %v1334_v35 = vadd.f32 %v1333_v0, %v2961_v40 }
 0x274   :  { %v1761_v29 = vmul.f32 %v1992_v20, %v1760_v19  ;;  %v1767_v43 = vmul.f32 %v1994_v12, %v1680_v36  ;;  %vm1773_vm12 = vweird.f32 %v1994_v12 }
 0x275   :  { %1944 = vst [vmem:[#allocation7 + $0x10] sm:$0xff] %v1928_v24  ;;  %1995 = vrsqrt.f32 %v1684_v63  ;;  %vm1774_vm14 = vmor %vm1772_vm13, %vm1773_vm12  ;;  %vm1782_vm0 = vweird.f32 %v1684_v63 }
 0x276   :  { %v1765_v22 = vsel %vm1764_vm11, %v1992_v20, %v1761_v29  ;;  %v1768_v51 = vmul.f32 %v1994_v12, %v1767_v43  ;;  %v1343_v24 = vpop.f32.mrf.mxu0  ;;  %v1456_v29 = vadd.f32 %v1455_v55, %v1334_v35 }
 0x277   :  { %v1891_v11 = vmul.f32 %v1765_v22, %v2788_v26 }
 0x278   :  { %v1769_v18 = vmul.f32 0.5, %v1768_v51  ;;  %v1590_v42 = vpop.f32.mrf.mxu2  ;;  %v1691_v53 = vpop.f32.mrf.mxu3 }
 0x279   :  { %v1910_v10 = vmul.f32 %v2999_v47, %v1891_v11  ;;  %v1591_v32 = vadd.f32 %v1590_v42, %v1444_v23  ;;  %v1339_v42 = vadd.f32 %v1338_v50, %v2965_v21 }
 0x27a   :  { %v1770_v57 = vsub.f32 1.5, %v1769_v18 }
 0x27b   :  { %v1996_v30 = vpop.eup %1995  ;;  %v1929_v5 = vadd.f32 %v3005_v44, %v1910_v10  ;;  %v1688_v54 = vadd.f32 %v1687_v49, %v1591_v32  ;;  %v1461_v49 = vpop.f32.mrf.mxu1 }
 0x27c   :  { %v1771_v20 = vmul.f32 %v1994_v12, %v1770_v57  ;;  %v1777_v58 = vmul.f32 %v1996_v30, %v1684_v63  ;;  %vm1783_vm15 = vweird.f32 %v1996_v30 }
 0x27d   :  { %1945 = vst [vmem:[#allocation7 + $0x18] sm:$0xff] %v1929_v5  ;;  %1997 = vrsqrt.f32 %v1688_v54  ;;  %vm1784_vm1 = vmor %vm1782_vm0, %vm1783_vm15  ;;  %vm1792_vm3 = vweird.f32 %v1688_v54 }
 0x27e   :  { %v1775_v26 = vsel %vm1774_vm14, %v1994_v12, %v1771_v20  ;;  %v1778_v38 = vmul.f32 %v1996_v30, %v1777_v58 }
 0x27f   :  { %v1892_v25 = vmul.f32 %v1775_v26, %v2799_v3 }
 0x280   :  { %v1779_v16 = vmul.f32 0.5, %v1778_v38  ;;  %v1594_v31 = vpop.f32.mrf.mxu2  ;;  %v1695_v15 = vpop.f32.mrf.mxu3 }
 0x281   :  { %v1911_v62 = vmul.f32 %v2999_v47, %v1892_v25  ;;  %v1595_v39 = vadd.f32 %v1594_v31, %v1450_v2  ;;  %v1348_v38 = vpop.f32.mrf.mxu0  ;;  %v1344_v2 = vadd.f32 %v1343_v24, %v2969_v9 }
 0x282   :  { %v1780_v34 = vsub.f32 1.5, %v1779_v16 }
 0x283   :  { %v1998_v56 = vpop.eup %1997  ;;  %v1930_v36 = vadd.f32 %v3005_v44, %v1911_v62  ;;  %v1692_v8 = vadd.f32 %v1691_v53, %v1595_v39  ;;  %v1467_v53 = vpop.f32.mrf.mxu1 }
 0x284   :  { %v1781_v19 = vmul.f32 %v1996_v30, %v1780_v34  ;;  %v1787_v12 = vmul.f32 %v1998_v56, %v1688_v54  ;;  %vm1793_vm2 = vweird.f32 %v1998_v56 }
 0x285   :  { %1946 = vst [vmem:[#allocation7 + $0x20] sm:$0xff] %v1930_v36  ;;  %1999 = vrsqrt.f32 %v1692_v8  ;;  %vm1794_vm4 = vmor %vm1792_vm3, %vm1793_vm2  ;;  %vm1802_vm6 = vweird.f32 %v1692_v8 }
 0x286   :  { %v1785_v3 = vsel %vm1784_vm1, %v1996_v30, %v1781_v19  ;;  %v1788_v60 = vmul.f32 %v1998_v56, %v1787_v12  ;;  %v1462_v30 = vadd.f32 %v1461_v49, %v1339_v42  ;;  %v1468_v49 = vadd.f32 %v1467_v53, %v1344_v2 }
 0x287   :  { %v1893_v1 = vmul.f32 %v1785_v3, %v2810_v4 }
 0x288   :  { %v1789_v43 = vmul.f32 0.5, %v1788_v60  ;;  %v1598_v22 = vpop.f32.mrf.mxu2  ;;  %v1699_v51 = vpop.f32.mrf.mxu3  ;;  %v1349_v60 = vadd.f32 %v1348_v38, %v2973_v48 }
 0x289   :  { %v1912_v11 = vmul.f32 %v2999_v47, %v1893_v1  ;;  %v1599_v23 = vadd.f32 %v1598_v22, %v1456_v29  ;;  %v1353_v24 = vpop.f32.mrf.mxu0 }
 0x28a   :  { %v1790_v18 = vsub.f32 1.5, %v1789_v43 }
 0x28b   :  { %v2000_v40 = vpop.eup %1999  ;;  %v1931_v0 = vadd.f32 %v3005_v44, %v1912_v11  ;;  %v1696_v63 = vadd.f32 %v1695_v15, %v1599_v23 }
 0x28c   :  { %v1791_v10 = vmul.f32 %v1998_v56, %v1790_v18  ;;  %v1797_v32 = vmul.f32 %v2000_v40, %v1692_v8  ;;  %vm1803_vm5 = vweird.f32 %v2000_v40 }
 0x28d   :  { %1947 = vst [vmem:[#allocation7 + $0x28] sm:$0xff] %v1931_v0  ;;  %2001 = vrsqrt.f32 %v1696_v63  ;;  %vm1804_vm7 = vmor %vm1802_vm6, %vm1803_vm5  ;;  %vm1812_vm9 = vweird.f32 %v1696_v63 }
 0x28e   :  { %v1795_v4 = vsel %vm1794_vm4, %v1998_v56, %v1791_v10  ;;  %v1798_v55 = vmul.f32 %v2000_v40, %v1797_v32  ;;  %v1354_v10 = vadd.f32 %v1353_v24, %v2977_v14 }
 0x28f   :  { %v1894_v57 = vmul.f32 %v1795_v4, %v2821_v33  ;;  %v1473_v33 = vpop.f32.mrf.mxu1 }
 0x290   :  { %v1799_v5 = vmul.f32 0.5, %v1798_v55  ;;  %v1602_v45 = vpop.f32.mrf.mxu2  ;;  %v1703_v20 = vpop.f32.mrf.mxu3 }
 0x291   :  { %v1913_v58 = vmul.f32 %v2999_v47, %v1894_v57  ;;  %v1603_v26 = vadd.f32 %v1602_v45, %v1462_v30 }
 0x292   :  { %v1800_v21 = vsub.f32 1.5, %v1799_v5 }
 0x293   :  { %v2002_v50 = vpop.eup %2001  ;;  %v1932_v54 = vadd.f32 %v3005_v44, %v1913_v58  ;;  %v1700_v25 = vadd.f32 %v1699_v51, %v1603_v26  ;;  %v1474_v51 = vadd.f32 %v1473_v33, %v1349_v60 }
 0x294   :  { %v1801_v16 = vmul.f32 %v2000_v40, %v1800_v21  ;;  %v1807_v31 = vmul.f32 %v2002_v50, %v1696_v63  ;;  %vm1813_vm8 = vweird.f32 %v2002_v50 }
 0x295   :  { %1948 = vst [vmem:[#allocation7 + $0x30] sm:$0xff] %v1932_v54  ;;  %2003 = vrsqrt.f32 %v1700_v25  ;;  %vm1814_vm10 = vmor %vm1812_vm9, %vm1813_vm8  ;;  %vm1822_vm12 = vweird.f32 %v1700_v25 }
 0x296   :  { %v1805_v15 = vsel %vm1804_vm7, %v2000_v40, %v1801_v16  ;;  %v1808_v62 = vmul.f32 %v2002_v50, %v1807_v31 }
 0x297   :  { %v1895_v39 = vmul.f32 %v1805_v15, %v2832_v7  ;;  %v1479_v11 = vpop.f32.mrf.mxu1 }
 0x298   :  { %v1809_v34 = vmul.f32 0.5, %v1808_v62  ;;  %v1606_v56 = vpop.f32.mrf.mxu2  ;;  %v1707_v9 = vpop.f32.mrf.mxu3  ;;  %v1480_v45 = vadd.f32 %v1479_v11, %v1354_v10 }
 0x299   :  { %v1914_v36 = vmul.f32 %v2999_v47, %v1895_v39  ;;  %v1607_v35 = vadd.f32 %v1606_v56, %v1468_v49 }
 0x29a   :  { %v1810_v19 = vsub.f32 1.5, %v1809_v34 }
 0x29b   :  { %v2004_v12 = vpop.eup %2003  ;;  %v1933_v8 = vadd.f32 %v3005_v44, %v1914_v36  ;;  %v1704_v3 = vadd.f32 %v1703_v20, %v1607_v35 }
 0x29c   :  { %v1811_v1 = vmul.f32 %v2002_v50, %v1810_v19  ;;  %v1817_v29 = vmul.f32 %v2004_v12, %v1700_v25  ;;  %vm1823_vm11 = vweird.f32 %v2004_v12 }
 0x29d   :  { %1949 = vst [vmem:[#allocation7 + $0x38] sm:$0xff] %v1933_v8  ;;  %2005 = vrsqrt.f32 %v1704_v3  ;;  %vm1824_vm13 = vmor %vm1822_vm12, %vm1823_vm11  ;;  %vm1832_vm15 = vweird.f32 %v1704_v3 }
 0x29e   :  { %v1815_v7 = vsel %vm1814_vm10, %v2002_v50, %v1811_v1  ;;  %v1818_v43 = vmul.f32 %v2004_v12, %v1817_v29 }
 0x29f   :  { %v1896_v22 = vmul.f32 %v1815_v7, %v2843_v28  ;;  %v1358_v28 = vpop.f32.mrf.mxu0  ;;  %v1485_v21 = vpop.f32.mrf.mxu1 }
 0x2a0   :  { %v1819_v23 = vmul.f32 0.5, %v1818_v43  ;;  %v1610_v18 = vpop.f32.mrf.mxu2  ;;  %v1711_v55 = vpop.f32.mrf.mxu3  ;;  %v1359_v2 = vadd.f32 %v1358_v28, %v2981_v46 }
 0x2a1   :  { %v1915_v40 = vmul.f32 %v2999_v47, %v1896_v22  ;;  %v1611_v0 = vadd.f32 %v1610_v18, %v1474_v51 }
 0x2a2   :  { %v1820_v42 = vsub.f32 1.5, %v1819_v23  ;;  %v1486_v39 = vadd.f32 %v1485_v21, %v1359_v2 }
 0x2a3   :  { %v2006_v48 = vpop.eup %2005  ;;  %v1934_v63 = vadd.f32 %v3005_v44, %v1915_v40  ;;  %v1708_v53 = vadd.f32 %v1707_v9, %v1611_v0 }
 0x2a4   :  { %v1821_v32 = vmul.f32 %v2004_v12, %v1820_v42  ;;  %v1827_v4 = vmul.f32 %v2006_v48, %v1704_v3  ;;  %vm1833_vm14 = vweird.f32 %v2006_v48 }
 0x2a5   :  { %1950 = vst [vmem:[#allocation7 + $0x40] sm:$0xff] %v1934_v63  ;;  %2007 = vrsqrt.f32 %v1708_v53  ;;  %vm1834_vm0 = vmor %vm1832_vm15, %vm1833_vm14  ;;  %vm1842_vm2 = vweird.f32 %v1708_v53 }
 0x2a6   :  { %v1825_v57 = vsel %vm1824_vm13, %v2004_v12, %v1821_v32  ;;  %v1828_v30 = vmul.f32 %v2006_v48, %v1827_v4 }
 0x2a7   :  { %v1897_v5 = vmul.f32 %v1825_v57, %v2854_v59  ;;  %v1363_v49 = vpop.f32.mrf.mxu0  ;;  %v1491_v3 = vpop.f32.mrf.mxu1 }
 0x2a8   :  { %v1829_v20 = vmul.f32 0.5, %v1828_v30  ;;  %v1614_v58 = vpop.f32.mrf.mxu2  ;;  %v1715_v15 = vpop.f32.mrf.mxu3  ;;  %v1364_v8 = vadd.f32 %v1363_v49, %v2985_v13 }
 0x2a9   :  { %v1916_v26 = vmul.f32 %v2999_v47, %v1897_v5  ;;  %v1615_v38 = vadd.f32 %v1614_v58, %v1480_v45 }
 0x2aa   :  { %v1830_v14 = vsub.f32 1.5, %v1829_v20  ;;  %v1492_v7 = vadd.f32 %v1491_v3, %v1364_v8 }
 0x2ab   :  { %v2008_v50 = vpop.eup %2007  ;;  %v1935_v54 = vadd.f32 %v3005_v44, %v1916_v26  ;;  %v1712_v25 = vadd.f32 %v1711_v55, %v1615_v38 }
 0x2ac   :  { %v1831_v16 = vmul.f32 %v2006_v48, %v1830_v14  ;;  %v1837_v31 = vmul.f32 %v2008_v50, %v1708_v53  ;;  %vm1843_vm1 = vweird.f32 %v2008_v50 }
 0x2ad   :  { %1951 = vst [vmem:[#allocation7 + $0x48] sm:$0xff] %v1935_v54  ;;  %2009 = vrsqrt.f32 %v1712_v25  ;;  %vm1844_vm3 = vmor %vm1842_vm2, %vm1843_vm1  ;;  %vm1852_vm5 = vweird.f32 %v1712_v25 }
 0x2ae   :  { %v1835_v59 = vsel %vm1834_vm0, %v2006_v48, %v1831_v16  ;;  %v1838_v33 = vmul.f32 %v2008_v50, %v1837_v31 }
 0x2af   :  { %v1898_v62 = vmul.f32 %v1835_v59, %v2865_v52  ;;  %v1368_v18 = vpop.f32.mrf.mxu0 }
 0x2b0   :  { %v1839_v34 = vmul.f32 0.5, %v1838_v33  ;;  %v1618_v56 = vpop.f32.mrf.mxu2  ;;  %v1719_v22 = vpop.f32.mrf.mxu3  ;;  %v1369_v48 = vadd.f32 %v1368_v18, %v2988_v37 }
 0x2b1   :  { %v1917_v36 = vmul.f32 %v2999_v47, %v1898_v62  ;;  %v1619_v35 = vadd.f32 %v1618_v56, %v1486_v39 }
 0x2b2   :  { %v1840_v19 = vsub.f32 1.5, %v1839_v34 }
 0x2b3   :  { %v2010_v46 = vpop.eup %2009  ;;  %v1936_v9 = vadd.f32 %v3005_v44, %v1917_v36  ;;  %v1716_v12 = vadd.f32 %v1715_v15, %v1619_v35 }
 0x2b4   :  { %v1841_v60 = vmul.f32 %v2008_v50, %v1840_v19  ;;  %v1847_v24 = vmul.f32 %v2010_v46, %v1712_v25  ;;  %vm1853_vm4 = vweird.f32 %v2010_v46 }
 0x2b5   :  { %1952 = vst [vmem:[#allocation7 + $0x50] sm:$0xff] %v1936_v9  ;;  %2011 = vrsqrt.f32 %v1716_v12  ;;  %vm1854_vm6 = vmor %vm1852_vm5, %vm1853_vm4  ;;  %vm1862_vm8 = vweird.f32 %v1716_v12 }
 0x2b6   :  { %v1845_v52 = vsel %vm1844_vm3, %v2008_v50, %v1841_v60  ;;  %v1848_v1 = vmul.f32 %v2010_v46, %v1847_v24 }
 0x2b7   :  { %v1899_v29 = vmul.f32 %v1845_v52, %v2876_v6  ;;  %v1497_v6 = vpop.f32.mrf.mxu1 }
 0x2b8   :  { %v1849_v43 = vmul.f32 0.5, %v1848_v1  ;;  %v1622_v51 = vpop.f32.mrf.mxu2  ;;  %v1498_v55 = vadd.f32 %v1497_v6, %v1369_v48  ;;  %v1723_v37 = vpop.f32.mrf.mxu3 }
 0x2b9   :  { %v1918_v11 = vmul.f32 %v2999_v47, %v1899_v29  ;;  %v1623_v23 = vadd.f32 %v1622_v51, %v1492_v7 }
 0x2ba   :  { %v1850_v13 = vsub.f32 1.5, %v1849_v43 }
 0x2bb   :  { %v2012_v40 = vpop.eup %2011  ;;  %v1937_v0 = vadd.f32 %v3005_v44, %v1918_v11  ;;  %v1720_v42 = vadd.f32 %v1719_v22, %v1623_v23 }
 0x2bc   :  { %v1851_v63 = vmul.f32 %v2010_v46, %v1850_v13  ;;  %v1857_v53 = vmul.f32 %v2012_v40, %v1716_v12  ;;  %vm1863_vm7 = vweird.f32 %v2012_v40 }
 0x2bd   :  { %1953 = vst [vmem:[#allocation7 + $0x58] sm:$0xff] %v1937_v0  ;;  %2013 = vrsqrt.f32 %v1720_v42  ;;  %vm1864_vm9 = vmor %vm1862_vm8, %vm1863_vm7  ;;  %vm1872_vm11 = vweird.f32 %v1720_v42 }
 0x2be   :  { %v1855_v10 = vsel %vm1854_vm6, %v2010_v46, %v1851_v63  ;;  %v1858_v32 = vmul.f32 %v2012_v40, %v1857_v53 }
 0x2bf   :  { %v1900_v4 = vmul.f32 %v1855_v10, %v2887_v41 }
 0x2c0   :  { %v1859_v28 = vmul.f32 0.5, %v1858_v32  ;;  %v1626_v57 = vpop.f32.mrf.mxu2 }
 0x2c1   :  { %v1919_v30 = vmul.f32 %v2999_v47, %v1900_v4  ;;  %v1627_v5 = vadd.f32 %v1626_v57, %v1498_v55 }
 0x2c2   :  { %v1860_v45 = vsub.f32 1.5, %v1859_v28 }
 0x2c3   :  { %v2014_v20 = vpop.eup %2013  ;;  %v1938_v58 = vadd.f32 %v3005_v44, %v1919_v30  ;;  %v1724_v26 = vadd.f32 %v1723_v37, %v1627_v5 }
 0x2c4   :  { %v1861_v38 = vmul.f32 %v2012_v40, %v1860_v45  ;;  %v1867_v21 = vmul.f32 %v2014_v20, %v1720_v42  ;;  %vm1873_vm10 = vweird.f32 %v2014_v20 }
 0x2c5   :  { %1954 = vst [vmem:[#allocation7 + $0x60] sm:$0xff] %v1938_v58  ;;  %2015 = vrsqrt.f32 %v1724_v26  ;;  %vm1874_vm12 = vmor %vm1872_vm11, %vm1873_vm10  ;;  %vm1882_vm14 = vweird.f32 %v1724_v26 }
 0x2c6   :  { %v1865_v41 = vsel %vm1864_vm9, %v2012_v40, %v1861_v38  ;;  %v1868_v14 = vmul.f32 %v2014_v20, %v1867_v21 }
 0x2c7   :  { %v1901_v50 = vmul.f32 %v1865_v41, %v2898_v61 }
 0x2c8   :  { %v1869_v54 = vmul.f32 0.5, %v1868_v14 }
 0x2c9   :  { %v1920_v25 = vmul.f32 %v2999_v47, %v1901_v50 }
 0x2ca   :  { %v1870_v2 = vsub.f32 1.5, %v1869_v54 }
 0x2cb   :  { %v2016_v16 = vpop.eup %2015  ;;  %v1939_v31 = vadd.f32 %v3005_v44, %v1920_v25 }
 0x2cc   :  { %v1871_v59 = vmul.f32 %v2014_v20, %v1870_v2  ;;  %v1877_v33 = vmul.f32 %v2016_v16, %v1724_v26  ;;  %vm1883_vm13 = vweird.f32 %v2016_v16 }
 0x2cd   :  { %1955 = vst [vmem:[#allocation7 + $0x68] sm:$0xff] %v1939_v31  ;;  %vm1884_vm15 = vmor %vm1882_vm14, %vm1883_vm13 }
 0x2ce   :  { %v1875_v15 = vsel %vm1874_vm12, %v2014_v20, %v1871_v59  ;;  %v1878_v62 = vmul.f32 %v2016_v16, %v1877_v33 }
 0x2cf   :  { %v1902_v39 = vmul.f32 %v1875_v15, %v2909_v17 }
 0x2d0   :  { %v1879_v49 = vmul.f32 0.5, %v1878_v62 }
 0x2d1   :  { %v1921_v61 = vmul.f32 %v2999_v47, %v1902_v39 }
 0x2d2   :  { %v1880_v34 = vsub.f32 1.5, %v1879_v49 }
 0x2d3   :  { %v1940_v56 = vadd.f32 %v3005_v44, %v1921_v61 }
 0x2d4   :  { %v1881_v36 = vmul.f32 %v2016_v16, %v1880_v34 }
 0x2d5   :  { %1956 = vst [vmem:[#allocation7 + $0x70] sm:$0xff] %v1940_v56 }
 0x2d6   :  { %v1885_v35 = vsel %vm1884_vm15, %v2016_v16, %v1881_v36 }
 0x2d7   :  { %v1903_v19 = vmul.f32 %v1885_v35, %v2918_v27 }
 0x2d9   :  { %v1922_v17 = vmul.f32 %v2999_v47, %v1903_v19 }
 0x2db   :  { %v1941_v46 = vadd.f32 %v3005_v44, %v1922_v17 }
 0x2dd   :  { %1957 = vst [vmem:[#allocation7 + $0x78] sm:$0xff] %v1941_v46 }
 0x2de   :  { %1970 = dma.vmem_to_hbm [thread:$0]  %s1963_s3, 2048, %s1965_s5, [#allocation4], %s2096_s23, %s2096_s23, %s2097_s24  }
 0x2df   :  { %2093 = dma.done.wait [#allocation4], 2048  }
 0x2e0   :  { %2094 = vsyncadd [#allocation4], 4294965248 }
 0x2e1   :  { %1975 = vsyncpa [#allocation3], 1 }
 0x2e2   :  { %1976 = vsyncpa [#allocation6], 1 }
 0x2e3   :  { %1977 = vsyncpa [#allocation4], 1 }

</bundles_post_ra>
